<compile_context>
chip_gen: v6e
topology: v6e:2x2x1
jax: 0.10.0
libtpu: 0.0.40
codegen_flags: <defaults>
</compile_context>

<pallas_src>
import jax
import jax.numpy as jnp
from jax import lax
from jax.experimental import pallas as pl
from jax.experimental.pallas import tpu as pltpu


def _round_up(x, m):
    return ((x + m - 1) // m) * m


def _cdiv(a, b):
    return (a + b - 1) // b


def _tile_config():
    """Generation-dependent (batch-tile cap, vmem_limit_bytes)."""
    vmem = None
    try:
        info = pltpu.get_tpu_info()
        vmem = getattr(info, "vmem_capacity_bytes", None)
    except Exception:
        vmem = None
    if vmem is None:
        vmem = 64 * 1024 * 1024                 # conservative: assume v7x per-TC
    if vmem >= 100 * 1024 * 1024:               # v5e / v6e: 128 MiB VMEM
        return 8192, 96 * 1024 * 1024
    return 2048, 48 * 1024 * 1024               # v7x: 64 MiB per TC -> headroom


def _softq_kernel(x_ref, a_ref, w1x_ref, w1a_ref, b1_ref,
                  w2_ref, b2_ref, w3_ref, b3_ref, o_ref):
    # fc1, split over obs/act halves (torch.cat eliminated).  Contract the
    # feature axis of the batch-major blocks directly (A @ B^T); the small
    # RHS transpose runs on the XLU, hidden under fc2's MXU work.  f32 (tiny K).
    dnums = (((1,), (1,)), ((), ()))
    h1 = lax.dot_general(w1x_ref[...], x_ref[...], dnums,
                         preferred_element_type=jnp.float32)
    h1 = h1 + lax.dot_general(w1a_ref[...], a_ref[...], dnums,
                              preferred_element_type=jnp.float32)
    h1 = jnp.maximum(h1 + b1_ref[...], 0.0)                    # (H, TILE_B) f32

    # fc2 + ReLU: bf16 MXU matmul with f32 accumulation (dominant cost).
    h2 = jnp.dot(w2_ref[...], h1.astype(w2_ref.dtype),
                 preferred_element_type=jnp.float32)
    h2 = jnp.maximum(h2 + b2_ref[...], 0.0)                    # (H, TILE_B) f32

    # fc3: output width 1 -> VPU multiply + sublane reduce (keeps the MXU free;
    # result is lane-dense with batch on the lane axis).
    q = jnp.sum(h2 * w3_ref[...], axis=0, keepdims=True) + b3_ref[...]
    o_ref[...] = q.astype(o_ref.dtype)                         # (1, TILE_B)


@jax.jit
def soft_q_forward(x, a, params):
    """x: (B, obs_dim) f32, a: (B, act_dim) f32 -> q: (B, 1) f32."""
    w1, b1, w2, b2, w3, b3 = params           # PyTorch layout: W (out, in), b (out,)
    B, obs_dim = x.shape
    act_dim = a.shape[1]
    H = w1.shape[0]

    tile_max, vmem_limit = _tile_config()
    if B <= tile_max:
        tile_b = _round_up(B, 128)
    else:
        # Split B as evenly as possible over the minimum number of tiles, so a
        # batch just above the cap does not waste lanes on padding.
        n_tiles = _cdiv(B, tile_max)
        tile_b = _round_up(_cdiv(B, n_tiles), 128)
    grid_b = _cdiv(B, tile_b)
    b_pad = grid_b * tile_b

    # One-time (tiny) weight layout prep; activations are passed through as-is.
    w1x = w1[:, :obs_dim].astype(jnp.float32)
    w1a = w1[:, obs_dim:].astype(jnp.float32)
    w2b = w2.astype(jnp.bfloat16)
    b1c = b1.reshape(H, 1).astype(jnp.float32)
    b2c = b2.reshape(H, 1).astype(jnp.float32)
    w3c = w3.reshape(H, 1).astype(jnp.float32)
    b3c = b3.reshape(1, 1).astype(jnp.float32)

    pinned = lambda i: (0, 0)                 # weights/biases stay VMEM-resident
    row_tile = lambda i: (i, 0)               # x/a: tile the batch (sublane) axis
    col_tile = lambda i: (0, i)               # q  : batch on the lane axis

    in_specs = [
        pl.BlockSpec((tile_b, obs_dim), row_tile),   # x (f32, batch-major)
        pl.BlockSpec((tile_b, act_dim), row_tile),   # a (f32, batch-major)
        pl.BlockSpec((H, obs_dim), pinned),          # W1x (f32)
        pl.BlockSpec((H, act_dim), pinned),          # W1a (f32)
        pl.BlockSpec((H, 1), pinned),                # b1
        pl.BlockSpec((H, H), pinned),                # W2 (bf16)
        pl.BlockSpec((H, 1), pinned),                # b2
        pl.BlockSpec((H, 1), pinned),                # w3 (as a column)
        pl.BlockSpec((1, 1), pinned),                # b3
    ]
    out_specs = pl.BlockSpec((1, tile_b), col_tile)

    flops = 2 * b_pad * ((obs_dim + act_dim) * H + H * H + H)
    bytes_accessed = (
        B * (obs_dim + act_dim) * 4                # f32 activations in
        + ((obs_dim + act_dim) * H) * 4            # f32 fc1 weights
        + H * H * 2                                # bf16 fc2 weights
        + (3 * H + 1) * 4                          # f32 biases + w3 column
        + b_pad * 4                                # f32 q out
    )

    q_t = pl.pallas_call(
        _softq_kernel,
        out_shape=jax.ShapeDtypeStruct((1, b_pad), jnp.float32),
        grid_spec=pltpu.PrefetchScalarGridSpec(
            num_scalar_prefetch=0,
            grid=(grid_b,),
            in_specs=in_specs,
            out_specs=out_specs,
        ),
        compiler_params=pltpu.CompilerParams(
            dimension_semantics=("parallel",),
            vmem_limit_bytes=vmem_limit,
        ),
        cost_estimate=pl.CostEstimate(
            flops=flops, transcendentals=0, bytes_accessed=bytes_accessed),
    )(x, a, w1x, w1a, b1c, w2b, b2c, w3c, b3c)

    return q_t[0, :B].reshape(B, 1)


def init_params(key, obs_dim, act_dim, hidden=256):
    """PyTorch nn.Linear default init; PyTorch layout W: (out, in), b: (out,)."""
    in_dim = obs_dim + act_dim
    keys = jax.random.split(key, 6)

    def uni(k, shape, fan_in):
        bound = 1.0 / jnp.sqrt(jnp.float32(fan_in))
        return jax.random.uniform(k, shape, jnp.float32, -bound, bound)

    w1 = uni(keys[0], (hidden, in_dim), in_dim)
    b1 = uni(keys[1], (hidden,), in_dim)
    w2 = uni(keys[2], (hidden, hidden), hidden)
    b2 = uni(keys[3], (hidden,), hidden)
    w3 = uni(keys[4], (1, hidden), hidden)
    b3 = uni(keys[5], (1,), hidden)
    return (w1, b1, w2, b2, w3, b3)


def _reference(x, a, params):
    # Pure-JAX f32 reference matching torch: relu(fc1(cat)) -> relu(fc2) -> fc3.
    w1, b1, w2, b2, w3, b3 = params
    xa = jnp.concatenate([x, a], axis=1)
    h1 = jnp.maximum(xa @ w1.T + b1, 0.0)
    h2 = jnp.maximum(h1 @ w2.T + b2, 0.0)
    return h2 @ w3.T + b3


if __name__ == "__main__":
    # batch=2, obs_dim=16, act_dim=8 -> concat dim 24, hidden 256, output 1.
    B, OBS, ACT = 2, 16, 8
    key = jax.random.PRNGKey(0)
    kx, ka, kp = jax.random.split(key, 3)

    x = jax.random.normal(kx, (B, OBS), jnp.float32)
    a = jax.random.normal(ka, (B, ACT), jnp.float32)
    params = init_params(kp, OBS, ACT, hidden=256)

    q = soft_q_forward(x, a, params)
    q = jax.block_until_ready(q)

    q_ref = _reference(x, a, params)
    assert q.shape == (B, 1), q.shape
    # fc2 runs in bf16 with f32 accumulation -> loosened vs the f32 reference.
    assert jnp.allclose(q, q_ref, atol=2e-2, rtol=2e-2), (q, q_ref)

    print("KERNEL_OK")
</pallas_src>

<mosaic_0001>
module attributes {stable_mosaic.version = 11 : i64} {
  func.func @_softq_kernel(%arg0: i32, %arg1: memref<128x16xf32, #tpu.memory_space<vmem>>, %arg2: memref<128x8xf32, #tpu.memory_space<vmem>>, %arg3: memref<256x16xf32, #tpu.memory_space<vmem>>, %arg4: memref<256x8xf32, #tpu.memory_space<vmem>>, %arg5: memref<256x1xf32, #tpu.memory_space<vmem>>, %arg6: memref<256x256xbf16, #tpu.memory_space<vmem>>, %arg7: memref<256x1xf32, #tpu.memory_space<vmem>>, %arg8: memref<256x1xf32, #tpu.memory_space<vmem>>, %arg9: memref<1x1xf32, #tpu.memory_space<vmem>>, %arg10: memref<1x128xf32, #tpu.memory_space<vmem>>) attributes {dimension_semantics = [#tpu.dimension_semantics<parallel>], iteration_bounds = array<i64: 1>, scalar_prefetch = 0 : i64, scratch_operands = 0 : i64, tpu.core_type = #tpu.core_type<tc>, window_params = [{transform_indices = @transform_0, window_bounds = array<i64: 128, 16>}, {transform_indices = @transform_1, window_bounds = array<i64: 128, 8>}, {pipeline_mode = #tpu.pipeline_mode<synchronous>, transform_indices = @transform_2, window_bounds = array<i64: 256, 16>}, {pipeline_mode = #tpu.pipeline_mode<synchronous>, transform_indices = @transform_3, window_bounds = array<i64: 256, 8>}, {pipeline_mode = #tpu.pipeline_mode<synchronous>, transform_indices = @transform_4, window_bounds = array<i64: 256, 1>}, {pipeline_mode = #tpu.pipeline_mode<synchronous>, transform_indices = @transform_5, window_bounds = array<i64: 256, 256>}, {pipeline_mode = #tpu.pipeline_mode<synchronous>, transform_indices = @transform_6, window_bounds = array<i64: 256, 1>}, {pipeline_mode = #tpu.pipeline_mode<synchronous>, transform_indices = @transform_7, window_bounds = array<i64: 256, 1>}, {pipeline_mode = #tpu.pipeline_mode<synchronous>, transform_indices = @transform_8, window_bounds = array<i64: 1, 1>}, {transform_indices = @transform_9, window_bounds = array<i64: 1, 128>}]} {
    %c0 = arith.constant 0 : index
    %c0_0 = arith.constant 0 : index
    %0 = vector.load %arg3[%c0, %c0_0] : memref<256x16xf32, #tpu.memory_space<vmem>>, vector<256x16xf32>
    %c0_1 = arith.constant 0 : index
    %c0_2 = arith.constant 0 : index
    %1 = vector.load %arg1[%c0_1, %c0_2] : memref<128x16xf32, #tpu.memory_space<vmem>>, vector<128x16xf32>
    %cst = arith.constant dense<0.000000e+00> : vector<256x128xf32>
    %2 = tpu.matmul %0, %1, %cst {dimension_numbers = #tpu.dot_dimension_numbers<[1], [1], [0], [0], [0, 0, 1, 0], [], []>} : vector<256x16xf32>, vector<128x16xf32>, vector<256x128xf32> -> vector<256x128xf32>
    %c0_3 = arith.constant 0 : index
    %c0_4 = arith.constant 0 : index
    %3 = vector.load %arg4[%c0_3, %c0_4] : memref<256x8xf32, #tpu.memory_space<vmem>>, vector<256x8xf32>
    %c0_5 = arith.constant 0 : index
    %c0_6 = arith.constant 0 : index
    %4 = vector.load %arg2[%c0_5, %c0_6] : memref<128x8xf32, #tpu.memory_space<vmem>>, vector<128x8xf32>
    %cst_7 = arith.constant dense<0.000000e+00> : vector<256x128xf32>
    %5 = tpu.matmul %3, %4, %cst_7 {dimension_numbers = #tpu.dot_dimension_numbers<[1], [1], [0], [0], [0, 0, 1, 0], [], []>} : vector<256x8xf32>, vector<128x8xf32>, vector<256x128xf32> -> vector<256x128xf32>
    %6 = arith.addf %2, %5 : vector<256x128xf32>
    %c0_8 = arith.constant 0 : index
    %c0_9 = arith.constant 0 : index
    %7 = vector.load %arg5[%c0_8, %c0_9] : memref<256x1xf32, #tpu.memory_space<vmem>>, vector<256x1xf32>
    %8 = vector.broadcast %7 : vector<256x1xf32> to vector<256x128xf32>
    %9 = arith.addf %6, %8 : vector<256x128xf32>
    %cst_10 = arith.constant 0.000000e+00 : f32
    %10 = vector.broadcast %cst_10 : f32 to vector<256x128xf32>
    %11 = arith.maximumf %9, %10 : vector<256x128xf32>
    %c0_11 = arith.constant 0 : index
    %c0_12 = arith.constant 0 : index
    %12 = vector.load %arg6[%c0_11, %c0_12] : memref<256x256xbf16, #tpu.memory_space<vmem>>, vector<256x256xbf16>
    %13 = arith.truncf %11 : vector<256x128xf32> to vector<256x128xbf16>
    %cst_13 = arith.constant dense<0.000000e+00> : vector<256x128xf32>
    %14 = tpu.matmul %12, %13, %cst_13 {dimension_numbers = #tpu.dot_dimension_numbers<[1], [0], [0], [1], [0, 0, 1, 1], [], []>} : vector<256x256xbf16>, vector<256x128xbf16>, vector<256x128xf32> -> vector<256x128xf32>
    %c0_14 = arith.constant 0 : index
    %c0_15 = arith.constant 0 : index
    %15 = vector.load %arg7[%c0_14, %c0_15] : memref<256x1xf32, #tpu.memory_space<vmem>>, vector<256x1xf32>
    %16 = vector.broadcast %15 : vector<256x1xf32> to vector<256x128xf32>
    %17 = arith.addf %14, %16 : vector<256x128xf32>
    %cst_16 = arith.constant 0.000000e+00 : f32
    %18 = vector.broadcast %cst_16 : f32 to vector<256x128xf32>
    %19 = arith.maximumf %17, %18 : vector<256x128xf32>
    %c0_17 = arith.constant 0 : index
    %c0_18 = arith.constant 0 : index
    %20 = vector.load %arg8[%c0_17, %c0_18] : memref<256x1xf32, #tpu.memory_space<vmem>>, vector<256x1xf32>
    %21 = vector.broadcast %20 : vector<256x1xf32> to vector<256x128xf32>
    %22 = arith.mulf %19, %21 : vector<256x128xf32>
    %cst_19 = arith.constant dense<0.000000e+00> : vector<128xf32>
    %23 = vector.multi_reduction <add>, %22, %cst_19 [0] : vector<256x128xf32> to vector<128xf32>
    %24 = vector.shape_cast %23 : vector<128xf32> to vector<1x128xf32>
    %c0_20 = arith.constant 0 : index
    %c0_21 = arith.constant 0 : index
    %25 = vector.load %arg9[%c0_20, %c0_21] : memref<1x1xf32, #tpu.memory_space<vmem>>, vector<1x1xf32>
    %26 = vector.broadcast %25 : vector<1x1xf32> to vector<1x128xf32>
    %27 = arith.addf %24, %26 : vector<1x128xf32>
    %c0_22 = arith.constant 0 : index
    %c0_23 = arith.constant 0 : index
    %28 = vector.load %arg10[%c0_22, %c0_23] : memref<1x128xf32, #tpu.memory_space<vmem>>, vector<1x128xf32>
    tpu.vector_store %arg10[%c0_22, %c0_23], %27 {strides = array<i32>} : memref<1x128xf32, #tpu.memory_space<vmem>>, vector<1x128xf32>,
    return
  }
  func.func @transform_0(%arg0: i32) -> (i32, i32) {
    %c0_i32 = arith.constant 0 : i32
    %c0_i32_0 = arith.constant 0 : i32
    return %arg0, %c0_i32 : i32, i32
  }
  func.func @transform_1(%arg0: i32) -> (i32, i32) {
    %c0_i32 = arith.constant 0 : i32
    %c0_i32_0 = arith.constant 0 : i32
    return %arg0, %c0_i32 : i32, i32
  }
  func.func @transform_2(%arg0: i32) -> (i32, i32) {
    %c0_i32 = arith.constant 0 : i32
    %c0_i32_0 = arith.constant 0 : i32
    %c0_i32_1 = arith.constant 0 : i32
    return %c0_i32, %c0_i32_0 : i32, i32
  }
  func.func @transform_3(%arg0: i32) -> (i32, i32) {
    %c0_i32 = arith.constant 0 : i32
    %c0_i32_0 = arith.constant 0 : i32
    %c0_i32_1 = arith.constant 0 : i32
    return %c0_i32, %c0_i32_0 : i32, i32
  }
  func.func @transform_4(%arg0: i32) -> (i32, i32) {
    %c0_i32 = arith.constant 0 : i32
    %c0_i32_0 = arith.constant 0 : i32
    %c0_i32_1 = arith.constant 0 : i32
    return %c0_i32, %c0_i32_0 : i32, i32
  }
  func.func @transform_5(%arg0: i32) -> (i32, i32) {
    %c0_i32 = arith.constant 0 : i32
    %c0_i32_0 = arith.constant 0 : i32
    %c0_i32_1 = arith.constant 0 : i32
    return %c0_i32, %c0_i32_0 : i32, i32
  }
  func.func @transform_6(%arg0: i32) -> (i32, i32) {
    %c0_i32 = arith.constant 0 : i32
    %c0_i32_0 = arith.constant 0 : i32
    %c0_i32_1 = arith.constant 0 : i32
    return %c0_i32, %c0_i32_0 : i32, i32
  }
  func.func @transform_7(%arg0: i32) -> (i32, i32) {
    %c0_i32 = arith.constant 0 : i32
    %c0_i32_0 = arith.constant 0 : i32
    %c0_i32_1 = arith.constant 0 : i32
    return %c0_i32, %c0_i32_0 : i32, i32
  }
  func.func @transform_8(%arg0: i32) -> (i32, i32) {
    %c0_i32 = arith.constant 0 : i32
    %c0_i32_0 = arith.constant 0 : i32
    %c0_i32_1 = arith.constant 0 : i32
    return %c0_i32, %c0_i32_0 : i32, i32
  }
  func.func @transform_9(%arg0: i32) -> (i32, i32) {
    %c0_i32 = arith.constant 0 : i32
    %c0_i32_0 = arith.constant 0 : i32
    return %c0_i32, %arg0 : i32, i32
  }
}

</mosaic_0001>

<bundles_post_ra>
// kernel: soft_q_forward.1
= control target key start
LH: loop header
LB: loop body
LE: loop exit
PB: predicated region body
PF: predicated region fallthrough
CT: control target
= control target key end

     0   :  { %vm131_vm0 = vcmask 64512   ;;  %v2544_v2 = vmov 0   ;;  %vm501_vm1 = vcmask 130048   ;;  %s3761_s1 = inlined_call_operand.vmem [shape: f32[2,8], index: 1, kind: input, shape index: {}]   ;;  %s3762_s4 = inlined_call_operand.vmem [shape: f32[256,1], index: 4, kind: input, shape index: {}]   ;;  %s3763_s3 = inlined_call_operand.vmem [shape: f32[256,8], index: 3, kind: input, shape index: {}]   ;;  %s3764_s0 = inlined_call_operand.vmem [shape: f32[2,16], index: 0, kind: input, shape index: {}]   ;;  %s3765_s6 = inlined_call_operand.vmem [shape: f32[256,1], index: 6, kind: input, shape index: {}]   ;;  %s3766_s8 = inlined_call_operand.<no memory space> [shape: f32[1,1], index: 8, kind: input, shape index: {}]   ;;  %s3767_s2 = inlined_call_operand.vmem [shape: f32[256,16], index: 2, kind: input, shape index: {}]   ;;  %s3768_s7 = inlined_call_operand.vmem [shape: f32[256,1], index: 7, kind: input, shape index: {}]   ;;  %s3769_s5 = inlined_call_operand.vmem [shape: bf16[256,256], index: 5, kind: input, shape index: {}]   ;;  %s3770_s9 = inlined_call_operand.vmem [shape: f32[1,128], index: 9, kind: output, shape index: {}]  }
   0x1   :  { %v130_v0 = vld [vmem:[%s3761_s1 + $0x78] sm:$0xff]  ;;  %v129_v1 = vld [vmem:[%s3761_s1 + $0x70] sm:$0xff]  ;;  %2494 = vset.pattern.permute.xlu0 %v2544_v2  ;;  %2495 = vset.pattern.permute.xlu1 %v2544_v2  ;;  %v128_v4 = vld [vmem:[%s3761_s1 + $0x68] sm:$0xff]  ;;  %v14_v59 = vstv %s3766_s8 }
   0x2   :  { %2333 = vmatprep.subr.msk.mxu1 %vm131_vm0, %v130_v0  ;;  %v901_v3 = vld [vmem:[%s3762_s4 + $0xf0] sm:$0xff]  ;;  %v902_v6 = vld [vmem:[%s3762_s4 + $0xf8] sm:$0xff]  ;;  %v127_v8 = vld [vmem:[%s3761_s1 + $0x60] sm:$0xff]  ;;  %15 = vst [vmem:[#allocation2] sm:$0x1] %v14_v59 }
   0x3   :  { %2334 = vmatpush3.xpose.msk.msra.mxu1 %vm131_vm0, %v130_v0  ;;  %1055 = vperm.xlu0 %2494, %v901_v3   ;;  %v885_v5 = vld [vmem:[%s3762_s4 + $0x70] sm:$0xff]  ;;  %v886_v7 = vld [vmem:[%s3762_s4 + $0x78] sm:$0xff]  ;;  %v899_v9 = vld [vmem:[%s3762_s4 + $0xe0] sm:$0xff] }
   0x4   :  { %2335 = vmatprep.subr.msk.mxu1 %vm131_vm0, %v129_v1  ;;  %975 = vperm.xlu1 %2495, %v885_v5   ;;  %v83_v10 = vld [vmem:[%s3763_s3] sm:$0xff]  ;;  %v900_v11 = vld [vmem:[%s3762_s4 + $0xe8] sm:$0xff]  ;;  %v126_v12 = vld [vmem:[%s3761_s1 + $0x58] sm:$0xff] }
   0x5   :  { %2365 = vmatprep.mubr.msk.f32.mxu1 %vm131_vm0, %v83_v10  ;;  %v883_v13 = vld [vmem:[%s3762_s4 + $0x60] sm:$0xff]  ;;  %v884_v14 = vld [vmem:[%s3762_s4 + $0x68] sm:$0xff]  ;;  %v125_v15 = vld [vmem:[%s3761_s1 + $0x50] sm:$0xff] }
   0x6   :  { %v897_v16 = vld [vmem:[%s3762_s4 + $0xd0] sm:$0xff]  ;;  %v898_v17 = vld [vmem:[%s3762_s4 + $0xd8] sm:$0xff]  ;;  %v124_v18 = vld [vmem:[%s3761_s1 + $0x48] sm:$0xff] }
   0x7   :  { %2336 = vmatpush3.xpose.msk.msra.mxu1 %vm131_vm0, %v129_v1  ;;  %1060 = vperm.xlu0 %2494, %v902_v6   ;;  %v881_v19 = vld [vmem:[%s3762_s4 + $0x50] sm:$0xff]  ;;  %v882_v20 = vld [vmem:[%s3762_s4 + $0x58] sm:$0xff]  ;;  %v123_v21 = vld [vmem:[%s3761_s1 + $0x40] sm:$0xff] }
   0x8   :  { %2337 = vmatprep.subr.msk.mxu1 %vm131_vm0, %v128_v4  ;;  %980 = vperm.xlu1 %2495, %v886_v7   ;;  %v895_v22 = vld [vmem:[%s3762_s4 + $0xc0] sm:$0xff]  ;;  %v896_v23 = vld [vmem:[%s3762_s4 + $0xc8] sm:$0xff]  ;;  %v122_v24 = vld [vmem:[%s3761_s1 + $0x38] sm:$0xff] }
   0x9   :  { %v879_v25 = vld [vmem:[%s3762_s4 + $0x40] sm:$0xff]  ;;  %v880_v26 = vld [vmem:[%s3762_s4 + $0x48] sm:$0xff]  ;;  %v121_v27 = vld [vmem:[%s3761_s1 + $0x30] sm:$0xff] }
   0xa   :  { %v893_v28 = vld [vmem:[%s3762_s4 + $0xb0] sm:$0xff]  ;;  %v894_v29 = vld [vmem:[%s3762_s4 + $0xb8] sm:$0xff]  ;;  %v120_v30 = vld [vmem:[%s3761_s1 + $0x28] sm:$0xff] }
   0xb   :  { %2338 = vmatpush3.xpose.msk.msra.mxu1 %vm131_vm0, %v128_v4  ;;  %1045 = vperm.xlu0 %2494, %v899_v9   ;;  %v877_v31 = vld [vmem:[%s3762_s4 + $0x30] sm:$0xff]  ;;  %v878_v32 = vld [vmem:[%s3762_s4 + $0x38] sm:$0xff]  ;;  %v119_v33 = vld [vmem:[%s3761_s1 + $0x20] sm:$0xff] }
   0xc   :  { %2339 = vmatprep.subr.msk.mxu1 %vm131_vm0, %v127_v8  ;;  %1050 = vperm.xlu1 %2495, %v900_v11   ;;  %v891_v34 = vld [vmem:[%s3762_s4 + $0xa0] sm:$0xff]  ;;  %v892_v35 = vld [vmem:[%s3762_s4 + $0xa8] sm:$0xff]  ;;  %v118_v36 = vld [vmem:[%s3761_s1 + $0x18] sm:$0xff] }
   0xd   :  { %v875_v37 = vld [vmem:[%s3762_s4 + $0x20] sm:$0xff]  ;;  %v876_v38 = vld [vmem:[%s3762_s4 + $0x28] sm:$0xff]  ;;  %v117_v39 = vld [vmem:[%s3761_s1 + $0x10] sm:$0xff] }
   0xe   :  { %v889_v40 = vld [vmem:[%s3762_s4 + $0x90] sm:$0xff]  ;;  %v890_v41 = vld [vmem:[%s3762_s4 + $0x98] sm:$0xff]  ;;  %v116_v42 = vld [vmem:[%s3761_s1 + $0x8] sm:$0xff] }
   0xf   :  { %2340 = vmatpush3.xpose.msk.msra.mxu1 %vm131_vm0, %v127_v8  ;;  %965 = vperm.xlu0 %2494, %v883_v13   ;;  %v873_v43 = vld [vmem:[%s3762_s4 + $0x10] sm:$0xff]  ;;  %v874_v44 = vld [vmem:[%s3762_s4 + $0x18] sm:$0xff]  ;;  %v115_v45 = vld [vmem:[%s3761_s1] sm:$0xff] }
  0x10   :  { %2341 = vmatprep.subr.msk.mxu1 %vm131_vm0, %v126_v12  ;;  %970 = vperm.xlu1 %2495, %v884_v14   ;;  %v887_v46 = vld [vmem:[%s3762_s4 + $0x80] sm:$0xff]  ;;  %v888_v47 = vld [vmem:[%s3762_s4 + $0x88] sm:$0xff]  ;;  %v82_v48 = vld [vmem:[%s3764_s0 + $0x78] sm:$0xff] }
  0x11   :  { %v871_v49 = vld [vmem:[%s3762_s4] sm:$0xff]  ;;  %v84_v50 = vld [vmem:[%s3763_s3 + $0x8] sm:$0xff]  ;;  %v85_v52 = vld [vmem:[%s3763_s3 + $0x10] sm:$0xff] }
  0x12   :  { %v872_v51 = vld [vmem:[%s3762_s4 + $0x8] sm:$0xff]  ;;  %v81_v53 = vld [vmem:[%s3764_s0 + $0x70] sm:$0xff]  ;;  %v1175_v54 = vld [vmem:[%s3765_s6] sm:$0xff] }
  0x13   :  { %2342 = vmatpush3.xpose.msk.msra.mxu1 %vm131_vm0, %v126_v12  ;;  %1035 = vperm.xlu0 %2494, %v897_v16   ;;  %v86_v55 = vld [vmem:[%s3763_s3 + $0x18] sm:$0xff]  ;;  %v1176_v56 = vld [vmem:[%s3765_s6 + $0x8] sm:$0xff]  ;;  %v87_v57 = vld [vmem:[%s3763_s3 + $0x20] sm:$0xff] }
  0x14   :  { %2343 = vmatprep.subr.msk.mxu1 %vm131_vm0, %v125_v15  ;;  %1040 = vperm.xlu1 %2495, %v898_v17   ;;  %v80_v58 = vld [vmem:[%s3764_s0 + $0x68] sm:$0xff]  ;;  %v1177_v60 = vld [vmem:[%s3765_s6 + $0x10] sm:$0xff]  ;;  %v1178_v62 = vld [vmem:[%s3765_s6 + $0x18] sm:$0xff] }
  0x15   :  { %v88_v61 = vld [vmem:[%s3763_s3 + $0x28] sm:$0xff]  ;;  %v89_v63 = vld [vmem:[%s3763_s3 + $0x30] sm:$0xff]  ;;  %v79_v0 = vld [vmem:[%s3764_s0 + $0x60] sm:$0xff] }
  0x16   :  { %v1179_v1 = vld [vmem:[%s3765_s6 + $0x20] sm:$0xff]  ;;  %v90_v2 = vld [vmem:[%s3763_s3 + $0x38] sm:$0xff]  ;;  %v1180_v3 = vld [vmem:[%s3765_s6 + $0x28] sm:$0xff] }
  0x17   :  { %2344 = vmatpush3.xpose.msk.msra.mxu1 %vm131_vm0, %v125_v15  ;;  %955 = vperm.xlu0 %2494, %v881_v19   ;;  %v91_v4 = vld [vmem:[%s3763_s3 + $0x40] sm:$0xff]  ;;  %v78_v5 = vld [vmem:[%s3764_s0 + $0x58] sm:$0xff]  ;;  %v1181_v6 = vld [vmem:[%s3765_s6 + $0x30] sm:$0xff] }
  0x18   :  { %2345 = vmatprep.subr.msk.mxu1 %vm131_vm0, %v124_v18  ;;  %960 = vperm.xlu1 %2495, %v882_v20   ;;  %v92_v7 = vld [vmem:[%s3763_s3 + $0x48] sm:$0xff]  ;;  %v1182_v8 = vld [vmem:[%s3765_s6 + $0x38] sm:$0xff]  ;;  %v93_v9 = vld [vmem:[%s3763_s3 + $0x50] sm:$0xff] }
  0x19   :  { %v77_v10 = vld [vmem:[%s3764_s0 + $0x50] sm:$0xff]  ;;  %v1183_v11 = vld [vmem:[%s3765_s6 + $0x40] sm:$0xff]  ;;  %v94_v12 = vld [vmem:[%s3763_s3 + $0x58] sm:$0xff] }
  0x1a   :  { %v1184_v13 = vld [vmem:[%s3765_s6 + $0x48] sm:$0xff]  ;;  %v95_v14 = vld [vmem:[%s3763_s3 + $0x60] sm:$0xff]  ;;  %v1185_v16 = vld [vmem:[%s3765_s6 + $0x50] sm:$0xff] }
  0x1b   :  { %2346 = vmatpush3.xpose.msk.msra.mxu1 %vm131_vm0, %v124_v18  ;;  %1025 = vperm.xlu0 %2494, %v895_v22   ;;  %v76_v15 = vld [vmem:[%s3764_s0 + $0x48] sm:$0xff]  ;;  %v1186_v18 = vld [vmem:[%s3765_s6 + $0x58] sm:$0xff]  ;;  %v97_v19 = vld [vmem:[%s3763_s3 + $0x70] sm:$0xff] }
  0x1c   :  { %2347 = vmatprep.subr.msk.mxu1 %vm131_vm0, %v123_v21  ;;  %1030 = vperm.xlu1 %2495, %v896_v23   ;;  %v96_v17 = vld [vmem:[%s3763_s3 + $0x68] sm:$0xff]  ;;  %v75_v20 = vld [vmem:[%s3764_s0 + $0x40] sm:$0xff]  ;;  %v98_v22 = vld [vmem:[%s3763_s3 + $0x78] sm:$0xff] }
  0x1d   :  { %v1188_v23 = vld [vmem:[%s3765_s6 + $0x68] sm:$0xff]  ;;  %v113_v59 = vld [vmem:[%s3763_s3 + $0xf0] sm:$0xff] }
  0x1f   :  { %2348 = vmatpush3.xpose.msk.msra.mxu1 %vm131_vm0, %v123_v21  ;;  %945 = vperm.xlu0 %2494, %v879_v25   ;;  %v1187_v21 = vld [vmem:[%s3765_s6 + $0x60] sm:$0xff]  ;;  %v74_v25 = vld [vmem:[%s3764_s0 + $0x38] sm:$0xff] }
  0x20   :  { %2349 = vmatprep.subr.msk.mxu1 %vm131_vm0, %v122_v24  ;;  %950 = vperm.xlu1 %2495, %v880_v26   ;;  %v1189_v26 = vld [vmem:[%s3765_s6 + $0x70] sm:$0xff] }
  0x23   :  { %2350 = vmatpush3.xpose.msk.msra.mxu1 %vm131_vm0, %v122_v24  ;;  %1015 = vperm.xlu0 %2494, %v893_v28   ;;  %v99_v24 = vld [vmem:[%s3763_s3 + $0x80] sm:$0xff]  ;;  %v1190_v28 = vld [vmem:[%s3765_s6 + $0x78] sm:$0xff] }
  0x24   :  { %2351 = vmatprep.subr.msk.mxu1 %vm131_vm0, %v121_v27  ;;  %1020 = vperm.xlu1 %2495, %v894_v29   ;;  %v101_v29 = vld [vmem:[%s3763_s3 + $0x90] sm:$0xff] }
  0x27   :  { %2352 = vmatpush3.xpose.msk.msra.mxu1 %vm131_vm0, %v121_v27  ;;  %935 = vperm.xlu0 %2494, %v877_v31   ;;  %v100_v27 = vld [vmem:[%s3763_s3 + $0x88] sm:$0xff]  ;;  %v1191_v31 = vld [vmem:[%s3765_s6 + $0x80] sm:$0xff] }
  0x28   :  { %2353 = vmatprep.subr.msk.mxu1 %vm131_vm0, %v120_v30  ;;  %940 = vperm.xlu1 %2495, %v878_v32   ;;  %v102_v32 = vld [vmem:[%s3763_s3 + $0x98] sm:$0xff] }
  0x2b   :  { %2354 = vmatpush3.xpose.msk.msra.mxu1 %vm131_vm0, %v120_v30  ;;  %1005 = vperm.xlu0 %2494, %v891_v34   ;;  %v73_v30 = vld [vmem:[%s3764_s0 + $0x30] sm:$0xff]  ;;  %v103_v34 = vld [vmem:[%s3763_s3 + $0xa0] sm:$0xff] }
  0x2c   :  { %2355 = vmatprep.subr.msk.mxu1 %vm131_vm0, %v119_v33  ;;  %1010 = vperm.xlu1 %2495, %v892_v35   ;;  %v72_v35 = vld [vmem:[%s3764_s0 + $0x28] sm:$0xff] }
  0x2f   :  { %2356 = vmatpush3.xpose.msk.msra.mxu1 %vm131_vm0, %v119_v33  ;;  %925 = vperm.xlu0 %2494, %v875_v37   ;;  %v1192_v33 = vld [vmem:[%s3765_s6 + $0x88] sm:$0xff] }
  0x30   :  { %2357 = vmatprep.subr.msk.mxu1 %vm131_vm0, %v118_v36  ;;  %930 = vperm.xlu1 %2495, %v876_v38   ;;  %v104_v37 = vld [vmem:[%s3763_s3 + $0xa8] sm:$0xff]  ;;  %v1194_v38 = vld [vmem:[%s3765_s6 + $0x98] sm:$0xff] }
  0x33   :  { %2358 = vmatpush3.xpose.msk.msra.mxu1 %vm131_vm0, %v118_v36  ;;  %995 = vperm.xlu0 %2494, %v889_v40   ;;  %v1193_v36 = vld [vmem:[%s3765_s6 + $0x90] sm:$0xff]  ;;  %v71_v40 = vld [vmem:[%s3764_s0 + $0x20] sm:$0xff] }
  0x34   :  { %2359 = vmatprep.subr.msk.mxu1 %vm131_vm0, %v117_v39  ;;  %1000 = vperm.xlu1 %2495, %v890_v41   ;;  %v1195_v41 = vld [vmem:[%s3765_s6 + $0xa0] sm:$0xff] }
  0x37   :  { %2360 = vmatpush3.xpose.msk.msra.mxu1 %vm131_vm0, %v117_v39  ;;  %915 = vperm.xlu0 %2494, %v873_v43   ;;  %v105_v39 = vld [vmem:[%s3763_s3 + $0xb0] sm:$0xff]  ;;  %v1196_v43 = vld [vmem:[%s3765_s6 + $0xa8] sm:$0xff] }
  0x38   :  { %2361 = vmatprep.subr.msk.mxu1 %vm131_vm0, %v116_v42  ;;  %920 = vperm.xlu1 %2495, %v874_v44   ;;  %v107_v44 = vld [vmem:[%s3763_s3 + $0xc0] sm:$0xff] }
  0x3b   :  { %2362 = vmatpush3.xpose.msk.msra.mxu1 %vm131_vm0, %v116_v42  ;;  %985 = vperm.xlu0 %2494, %v887_v46   ;;  %v106_v42 = vld [vmem:[%s3763_s3 + $0xb8] sm:$0xff]  ;;  %v1197_v46 = vld [vmem:[%s3765_s6 + $0xb0] sm:$0xff] }
  0x3c   :  { %2363 = vmatprep.subr.msk.mxu1 %vm131_vm0, %v115_v45  ;;  %990 = vperm.xlu1 %2495, %v888_v47   ;;  %v108_v47 = vld [vmem:[%s3763_s3 + $0xc8] sm:$0xff] }
  0x3f   :  { %2364 = vmatpush3.xpose.msk.msra.mxu1 %vm131_vm0, %v115_v45  ;;  %905 = vperm.xlu0 %2494, %v871_v49   ;;  %v70_v45 = vld [vmem:[%s3764_s0 + $0x18] sm:$0xff]  ;;  %v109_v49 = vld [vmem:[%s3763_s3 + $0xd0] sm:$0xff] }
  0x40   :  { %2413 = vmatprep.subr.msk.mxu1 %vm501_vm1, %v82_v48  ;;  %910 = vperm.xlu1 %2495, %v872_v51   ;;  %v1199_v51 = vld [vmem:[%s3765_s6 + $0xc0] sm:$0xff] }
  0x42   :  { %2366 = vmatmul.mubr.msk.f32.vlgmr.msra.gmra.mxu1 %vm131_vm0, %v84_v50  ;;  %v69_v50 = vld [vmem:[%s3764_s0 + $0x10] sm:$0xff] }
  0x43   :  { %2414 = vmatpush3.xpose.msk.msra.mxu1 %vm501_vm1, %v82_v48  ;;  %2368 = vmatprep.mubr.msk.f32.mxu1 %vm131_vm0, %v85_v52  ;;  %v1198_v48 = vld [vmem:[%s3765_s6 + $0xb8] sm:$0xff] }
  0x44   :  { %2415 = vmatprep.subr.msk.mxu1 %vm501_vm1, %v81_v53  ;;  %1209 = vperm.xlu0 %2494, %v1175_v54   ;;  %v110_v52 = vld [vmem:[%s3763_s3 + $0xd8] sm:$0xff]  ;;  %v111_v54 = vld [vmem:[%s3763_s3 + $0xe0] sm:$0xff] }
  0x45   :  { %1214 = vperm.xlu1 %2495, %v1176_v56   ;;  %v1201_v56 = vld [vmem:[%s3765_s6 + $0xd0] sm:$0xff] }
  0x46   :  { %2369 = vmatmul.mubr.msk.f32.gmra.mxu1 %vm131_vm0, %v86_v55  ;;  %v68_v55 = vld [vmem:[%s3764_s0 + $0x8] sm:$0xff] }
  0x47   :  { %2416 = vmatpush3.xpose.msk.msra.mxu1 %vm501_vm1, %v81_v53  ;;  %2371 = vmatprep.mubr.msk.f32.mxu1 %vm131_vm0, %v87_v57  ;;  %v1200_v53 = vld [vmem:[%s3765_s6 + $0xc8] sm:$0xff] }
  0x48   :  { %2417 = vmatprep.subr.msk.mxu1 %vm501_vm1, %v80_v58  ;;  %1219 = vperm.xlu0 %2494, %v1177_v60   ;;  %v112_v57 = vld [vmem:[%s3763_s3 + $0xe8] sm:$0xff]  ;;  %v67_v60 = vld [vmem:[%s3764_s0] sm:$0xff] }
  0x49   :  { %1224 = vperm.xlu1 %2495, %v1178_v62   ;;  %v114_v62 = vld [vmem:[%s3763_s3 + $0xf8] sm:$0xff] }
  0x4a   :  { %2372 = vmatmul.mubr.msk.f32.gmra.mxu1 %vm131_vm0, %v88_v61  ;;  %v1203_v61 = vld [vmem:[%s3765_s6 + $0xe0] sm:$0xff] }
  0x4b   :  { %2418 = vmatpush3.xpose.msk.msra.mxu1 %vm501_vm1, %v80_v58  ;;  %2374 = vmatprep.mubr.msk.f32.mxu1 %vm131_vm0, %v89_v63  ;;  %v1202_v58 = vld [vmem:[%s3765_s6 + $0xd8] sm:$0xff]  ;;  %v1204_v63 = vld [vmem:[%s3765_s6 + $0xe8] sm:$0xff] }
  0x4c   :  { %2419 = vmatprep.subr.msk.mxu1 %vm501_vm1, %v79_v0  ;;  %1229 = vperm.xlu0 %2494, %v1179_v1   ;;  %v1720_v1 = vld [vmem:[%s3768_s7] sm:$0xff] }
  0x4d   :  { %1234 = vperm.xlu1 %2495, %v1180_v3   ;;  %v1721_v3 = vld [vmem:[%s3768_s7 + $0x8] sm:$0xff] }
  0x4e   :  { %2375 = vmatmul.mubr.msk.f32.gmra.mxu1 %vm131_vm0, %v90_v2  ;;  %v36_v2 = vld [vmem:[%s3767_s2 + $0x8] sm:$0xff] }
  0x4f   :  { %2420 = vmatpush3.xpose.msk.msra.mxu1 %vm501_vm1, %v79_v0  ;;  %2377 = vmatprep.mubr.msk.f32.mxu1 %vm131_vm0, %v91_v4  ;;  %v35_v0 = vld [vmem:[%s3767_s2] sm:$0xff]  ;;  %v37_v4 = vld [vmem:[%s3767_s2 + $0x10] sm:$0xff] }
  0x50   :  { %2421 = vmatprep.subr.msk.mxu1 %vm501_vm1, %v78_v5  ;;  %1239 = vperm.xlu0 %2494, %v1181_v6   ;;  %v38_v6 = vld [vmem:[%s3767_s2 + $0x18] sm:$0xff] }
  0x51   :  { %1244 = vperm.xlu1 %2495, %v1182_v8   ;;  %v39_v8 = vld [vmem:[%s3767_s2 + $0x20] sm:$0xff] }
  0x52   :  { %2378 = vmatmul.mubr.msk.f32.gmra.mxu1 %vm131_vm0, %v92_v7  ;;  %v1723_v7 = vld [vmem:[%s3768_s7 + $0x18] sm:$0xff] }
  0x53   :  { %2422 = vmatpush3.xpose.msk.msra.mxu1 %vm501_vm1, %v78_v5  ;;  %2380 = vmatprep.mubr.msk.f32.mxu1 %vm131_vm0, %v93_v9  ;;  %v1722_v5 = vld [vmem:[%s3768_s7 + $0x10] sm:$0xff]  ;;  %v1724_v9 = vld [vmem:[%s3768_s7 + $0x20] sm:$0xff] }
  0x54   :  { %2423 = vmatprep.subr.msk.mxu1 %vm501_vm1, %v77_v10  ;;  %1249 = vperm.xlu0 %2494, %v1183_v11   ;;  %v1725_v11 = vld [vmem:[%s3768_s7 + $0x28] sm:$0xff] }
  0x55   :  { %1254 = vperm.xlu1 %2495, %v1184_v13   ;;  %v1726_v13 = vld [vmem:[%s3768_s7 + $0x30] sm:$0xff] }
  0x56   :  { %2381 = vmatmul.mubr.msk.f32.gmra.mxu1 %vm131_vm0, %v94_v12  ;;  %v41_v12 = vld [vmem:[%s3767_s2 + $0x30] sm:$0xff] }
  0x57   :  { %2424 = vmatpush3.xpose.msk.msra.mxu1 %vm501_vm1, %v77_v10  ;;  %2383 = vmatprep.mubr.msk.f32.mxu1 %vm131_vm0, %v95_v14  ;;  %v40_v10 = vld [vmem:[%s3767_s2 + $0x28] sm:$0xff]  ;;  %v42_v14 = vld [vmem:[%s3767_s2 + $0x38] sm:$0xff] }
  0x58   :  { %2425 = vmatprep.subr.msk.mxu1 %vm501_vm1, %v76_v15  ;;  %1259 = vperm.xlu0 %2494, %v1185_v16   ;;  %v43_v16 = vld [vmem:[%s3767_s2 + $0x40] sm:$0xff] }
  0x59   :  { %1264 = vperm.xlu1 %2495, %v1186_v18   ;;  %v44_v18 = vld [vmem:[%s3767_s2 + $0x48] sm:$0xff] }
  0x5a   :  { %2384 = vmatmul.mubr.msk.f32.gmra.mxu1 %vm131_vm0, %v96_v17  ;;  %v1728_v17 = vld [vmem:[%s3768_s7 + $0x40] sm:$0xff] }
  0x5b   :  { %2426 = vmatpush3.xpose.msk.msra.mxu1 %vm501_vm1, %v76_v15  ;;  %2386 = vmatprep.mubr.msk.f32.mxu1 %vm131_vm0, %v97_v19  ;;  %v1727_v15 = vld [vmem:[%s3768_s7 + $0x38] sm:$0xff]  ;;  %v1729_v19 = vld [vmem:[%s3768_s7 + $0x48] sm:$0xff] }
  0x5c   :  { %2427 = vmatprep.subr.msk.mxu1 %vm501_vm1, %v75_v20  ;;  %1269 = vperm.xlu0 %2494, %v1187_v21   ;;  %v1730_v21 = vld [vmem:[%s3768_s7 + $0x50] sm:$0xff] }
  0x5d   :  { %1274 = vperm.xlu1 %2495, %v1188_v23   ;;  %v1731_v23 = vld [vmem:[%s3768_s7 + $0x58] sm:$0xff] }
  0x5e   :  { %2387 = vmatmul.mubr.msk.f32.gmra.mxu1 %vm131_vm0, %v98_v22  ;;  %v46_v22 = vld [vmem:[%s3767_s2 + $0x58] sm:$0xff] }
  0x5f   :  { %2428 = vmatpush3.xpose.msk.msra.mxu1 %vm501_vm1, %v75_v20  ;;  %2389 = vmatprep.mubr.msk.f32.mxu1 %vm131_vm0, %v99_v24  ;;  %v45_v20 = vld [vmem:[%s3767_s2 + $0x50] sm:$0xff]  ;;  %v47_v24 = vld [vmem:[%s3767_s2 + $0x60] sm:$0xff] }
  0x60   :  { %2429 = vmatprep.subr.msk.mxu1 %vm501_vm1, %v74_v25  ;;  %1279 = vperm.xlu0 %2494, %v1189_v26   ;;  %v48_v26 = vld [vmem:[%s3767_s2 + $0x68] sm:$0xff] }
  0x61   :  { %1284 = vperm.xlu1 %2495, %v1190_v28   ;;  %v49_v28 = vld [vmem:[%s3767_s2 + $0x70] sm:$0xff] }
  0x62   :  { %2390 = vmatmul.mubr.msk.f32.gmra.mxu1 %vm131_vm0, %v100_v27  ;;  %v1733_v27 = vld [vmem:[%s3768_s7 + $0x68] sm:$0xff] }
  0x63   :  { %2430 = vmatpush3.xpose.msk.msra.mxu1 %vm501_vm1, %v74_v25  ;;  %2392 = vmatprep.mubr.msk.f32.mxu1 %vm131_vm0, %v101_v29  ;;  %v1732_v25 = vld [vmem:[%s3768_s7 + $0x60] sm:$0xff]  ;;  %v1734_v29 = vld [vmem:[%s3768_s7 + $0x70] sm:$0xff] }
  0x64   :  { %2431 = vmatprep.subr.msk.mxu1 %vm501_vm1, %v73_v30  ;;  %1289 = vperm.xlu0 %2494, %v1191_v31   ;;  %v1735_v31 = vld [vmem:[%s3768_s7 + $0x78] sm:$0xff] }
  0x65   :  { %1294 = vperm.xlu1 %2495, %v1192_v33   ;;  %v1736_v33 = vld [vmem:[%s3768_s7 + $0x80] sm:$0xff] }
  0x66   :  { %2393 = vmatmul.mubr.msk.f32.gmra.mxu1 %vm131_vm0, %v102_v32  ;;  %v51_v32 = vld [vmem:[%s3767_s2 + $0x80] sm:$0xff] }
  0x67   :  { %2432 = vmatpush3.xpose.msk.msra.mxu1 %vm501_vm1, %v73_v30  ;;  %2395 = vmatprep.mubr.msk.f32.mxu1 %vm131_vm0, %v103_v34  ;;  %v50_v30 = vld [vmem:[%s3767_s2 + $0x78] sm:$0xff]  ;;  %v52_v34 = vld [vmem:[%s3767_s2 + $0x88] sm:$0xff] }
  0x68   :  { %2433 = vmatprep.subr.msk.mxu1 %vm501_vm1, %v72_v35  ;;  %1299 = vperm.xlu0 %2494, %v1193_v36   ;;  %v53_v36 = vld [vmem:[%s3767_s2 + $0x90] sm:$0xff] }
  0x69   :  { %1304 = vperm.xlu1 %2495, %v1194_v38   ;;  %v54_v38 = vld [vmem:[%s3767_s2 + $0x98] sm:$0xff] }
  0x6a   :  { %2396 = vmatmul.mubr.msk.f32.gmra.mxu1 %vm131_vm0, %v104_v37  ;;  %v1738_v37 = vld [vmem:[%s3768_s7 + $0x90] sm:$0xff] }
  0x6b   :  { %2434 = vmatpush3.xpose.msk.msra.mxu1 %vm501_vm1, %v72_v35  ;;  %2398 = vmatprep.mubr.msk.f32.mxu1 %vm131_vm0, %v105_v39  ;;  %v1737_v35 = vld [vmem:[%s3768_s7 + $0x88] sm:$0xff]  ;;  %v1739_v39 = vld [vmem:[%s3768_s7 + $0x98] sm:$0xff] }
  0x6c   :  { %2435 = vmatprep.subr.msk.mxu1 %vm501_vm1, %v71_v40  ;;  %1309 = vperm.xlu0 %2494, %v1195_v41   ;;  %v1740_v41 = vld [vmem:[%s3768_s7 + $0xa0] sm:$0xff] }
  0x6d   :  { %1314 = vperm.xlu1 %2495, %v1196_v43   ;;  %v1741_v43 = vld [vmem:[%s3768_s7 + $0xa8] sm:$0xff] }
  0x6e   :  { %2399 = vmatmul.mubr.msk.f32.gmra.mxu1 %vm131_vm0, %v106_v42  ;;  %v56_v42 = vld [vmem:[%s3767_s2 + $0xa8] sm:$0xff] }
  0x6f   :  { %2436 = vmatpush3.xpose.msk.msra.mxu1 %vm501_vm1, %v71_v40  ;;  %2401 = vmatprep.mubr.msk.f32.mxu1 %vm131_vm0, %v107_v44  ;;  %v55_v40 = vld [vmem:[%s3767_s2 + $0xa0] sm:$0xff]  ;;  %v57_v44 = vld [vmem:[%s3767_s2 + $0xb0] sm:$0xff] }
  0x70   :  { %2437 = vmatprep.subr.msk.mxu1 %vm501_vm1, %v70_v45  ;;  %1319 = vperm.xlu0 %2494, %v1197_v46   ;;  %v58_v46 = vld [vmem:[%s3767_s2 + $0xb8] sm:$0xff] }
  0x71   :  { %1324 = vperm.xlu1 %2495, %v1198_v48   ;;  %v59_v48 = vld [vmem:[%s3767_s2 + $0xc0] sm:$0xff] }
  0x72   :  { %2402 = vmatmul.mubr.msk.f32.gmra.mxu1 %vm131_vm0, %v108_v47  ;;  %v1743_v47 = vld [vmem:[%s3768_s7 + $0xb8] sm:$0xff] }
  0x73   :  { %2438 = vmatpush3.xpose.msk.msra.mxu1 %vm501_vm1, %v70_v45  ;;  %2404 = vmatprep.mubr.msk.f32.mxu1 %vm131_vm0, %v109_v49  ;;  %v1742_v45 = vld [vmem:[%s3768_s7 + $0xb0] sm:$0xff]  ;;  %v1744_v49 = vld [vmem:[%s3768_s7 + $0xc0] sm:$0xff] }
  0x74   :  { %2439 = vmatprep.subr.msk.mxu1 %vm501_vm1, %v69_v50  ;;  %1329 = vperm.xlu0 %2494, %v1199_v51   ;;  %v1745_v51 = vld [vmem:[%s3768_s7 + $0xc8] sm:$0xff] }
  0x75   :  { %1334 = vperm.xlu1 %2495, %v1200_v53   ;;  %v1746_v53 = vld [vmem:[%s3768_s7 + $0xd0] sm:$0xff] }
  0x76   :  { %2405 = vmatmul.mubr.msk.f32.gmra.mxu1 %vm131_vm0, %v110_v52  ;;  %v61_v52 = vld [vmem:[%s3767_s2 + $0xd0] sm:$0xff] }
  0x77   :  { %2440 = vmatpush3.xpose.msk.msra.mxu1 %vm501_vm1, %v69_v50  ;;  %2407 = vmatprep.mubr.msk.f32.mxu1 %vm131_vm0, %v111_v54  ;;  %v60_v50 = vld [vmem:[%s3767_s2 + $0xc8] sm:$0xff]  ;;  %v62_v54 = vld [vmem:[%s3767_s2 + $0xd8] sm:$0xff] }
  0x78   :  { %2441 = vmatprep.subr.msk.mxu1 %vm501_vm1, %v68_v55  ;;  %1339 = vperm.xlu0 %2494, %v1201_v56   ;;  %v63_v56 = vld [vmem:[%s3767_s2 + $0xe0] sm:$0xff] }
  0x79   :  { %1344 = vperm.xlu1 %2495, %v1202_v58   ;;  %v64_v58 = vld [vmem:[%s3767_s2 + $0xe8] sm:$0xff] }
  0x7a   :  { %2408 = vmatmul.mubr.msk.f32.gmra.mxu1 %vm131_vm0, %v112_v57  ;;  %v1205_v57 = vld [vmem:[%s3765_s6 + $0xf0] sm:$0xff] }
  0x7b   :  { %2442 = vmatpush3.xpose.msk.msra.mxu1 %vm501_vm1, %v68_v55  ;;  %2410 = vmatprep.mubr.msk.f32.mxu1 %vm131_vm0, %v113_v59  ;;  %v1747_v55 = vld [vmem:[%s3768_s7 + $0xd8] sm:$0xff]  ;;  %v1748_v59 = vld [vmem:[%s3768_s7 + $0xe0] sm:$0xff] }
  0x7c   :  { %2443 = vmatprep.subr.msk.mxu1 %vm501_vm1, %v67_v60  ;;  %1349 = vperm.xlu0 %2494, %v1203_v61   ;;  %v1206_v61 = vld [vmem:[%s3765_s6 + $0xf8] sm:$0xff] }
  0x7d   :  { %1354 = vperm.xlu1 %2495, %v1204_v63   ;;  %v1749_v63 = vld [vmem:[%s3768_s7 + $0xe8] sm:$0xff] }
  0x7e   :  { %2411 = vmatmul.mubr.msk.f32.gmra.mxu1 %vm131_vm0, %v114_v62  ;;  %v66_v62 = vld [vmem:[%s3767_s2 + $0xf8] sm:$0xff] }
  0x7f   :  { %2444 = vmatpush3.xpose.msk.msra.mxu1 %vm501_vm1, %v67_v60  ;;  %2445 = vmatprep.mubr.msk.f32.mxu1 %vm501_vm1, %v35_v0  ;;  %v65_v60 = vld [vmem:[%s3767_s2 + $0xf0] sm:$0xff] }
  0x80   :  { %1754 = vperm.xlu0 %2494, %v1720_v1   ;;  %v1750_v0 = vld [vmem:[%s3768_s7 + $0xf0] sm:$0xff]  ;;  %v1751_v1 = vld [vmem:[%s3768_s7 + $0xf8] sm:$0xff] }
  0x81   :  { %1759 = vperm.xlu1 %2495, %v1721_v3   ;;  %v3302_v3 = vpop.permute.xlu1 %975 }
  0x82   :  { %2446 = vmatmul.mubr.msk.f32.vlgmr.msra.gmra.mxu1 %vm501_vm1, %v36_v2  ;;  %v1981_v2 = vld [vmem:[#allocation2] sm:$0x1] }
  0x83   :  { %2448 = vmatprep.mubr.msk.f32.mxu1 %vm501_vm1, %v37_v4  ;;  %v3304_v4 = vpop.permute.xlu0 %1055 }
  0x84   :  { %1764 = vperm.xlu0 %2494, %v1722_v5   ;;  %3771 = vst [vmem:[#allocation3_spill] sm:$0xff] %v3304_v4 }
  0x85   :  { %1769 = vperm.xlu1 %2495, %v1723_v7   ;;  %v3306_v5 = vpop.permute.xlu1 %980 }
  0x86   :  { %2449 = vmatmul.mubr.msk.f32.gmra.mxu1 %vm501_vm1, %v38_v6 }
  0x87   :  { %2451 = vmatprep.mubr.msk.f32.mxu1 %vm501_vm1, %v39_v8  ;;  %v3308_v6 = vpop.permute.xlu0 %1060 }
  0x88   :  { %1774 = vperm.xlu0 %2494, %v1724_v9   ;;  %3772 = vst [vmem:[#allocation4_spill] sm:$0xff] %v3308_v6 }
  0x89   :  { %1779 = vperm.xlu1 %2495, %v1725_v11   ;;  %v3310_v7 = vpop.permute.xlu1 %1050 }
  0x8a   :  { %2452 = vmatmul.mubr.msk.f32.gmra.mxu1 %vm501_vm1, %v40_v10  ;;  %3773 = vst [vmem:[#allocation5_spill] sm:$0xff] %v3310_v7 }
  0x8b   :  { %2454 = vmatprep.mubr.msk.f32.mxu1 %vm501_vm1, %v41_v12  ;;  %v3312_v8 = vpop.permute.xlu0 %1045 }
  0x8c   :  { %1784 = vperm.xlu0 %2494, %v1726_v13   ;;  %3774 = vst [vmem:[#allocation6_spill] sm:$0xff] %v3312_v8 }
  0x8d   :  { %1789 = vperm.xlu1 %2495, %v1727_v15   ;;  %v3314_v9 = vpop.permute.xlu1 %970 }
  0x8e   :  { %2455 = vmatmul.mubr.msk.f32.gmra.mxu1 %vm501_vm1, %v42_v14 }
  0x8f   :  { %2457 = vmatprep.mubr.msk.f32.mxu1 %vm501_vm1, %v43_v16  ;;  %v3316_v10 = vpop.permute.xlu0 %965 }
  0x90   :  { %1794 = vperm.xlu0 %2494, %v1728_v17  }
  0x91   :  { %1799 = vperm.xlu1 %2495, %v1729_v19   ;;  %v3318_v11 = vpop.permute.xlu1 %1040 }
  0x92   :  { %2458 = vmatmul.mubr.msk.f32.gmra.mxu1 %vm501_vm1, %v44_v18  ;;  %3775 = vst [vmem:[#allocation7_spill] sm:$0xff] %v3318_v11 }
  0x93   :  { %2460 = vmatprep.mubr.msk.f32.mxu1 %vm501_vm1, %v45_v20  ;;  %v3320_v13 = vpop.permute.xlu0 %1035 }
  0x94   :  { %1804 = vperm.xlu0 %2494, %v1730_v21   ;;  %3776 = vst [vmem:[#allocation8_spill] sm:$0xff] %v3320_v13 }
  0x95   :  { %1809 = vperm.xlu1 %2495, %v1731_v23   ;;  %v3322_v16 = vpop.permute.xlu1 %960 }
  0x96   :  { %2461 = vmatmul.mubr.msk.f32.gmra.mxu1 %vm501_vm1, %v46_v22 }
  0x97   :  { %2463 = vmatprep.mubr.msk.f32.mxu1 %vm501_vm1, %v47_v24  ;;  %v3326_v18 = vpop.permute.xlu0 %955 }
  0x98   :  { %1814 = vperm.xlu0 %2494, %v1732_v25  }
  0x99   :  { %1819 = vperm.xlu1 %2495, %v1733_v27   ;;  %v3332_v21 = vpop.permute.xlu1 %1030 }
  0x9a   :  { %2464 = vmatmul.mubr.msk.f32.gmra.mxu1 %vm501_vm1, %v48_v26  ;;  %3777 = vst [vmem:[#allocation9_spill] sm:$0xff] %v3332_v21 }
  0x9b   :  { %2466 = vmatprep.mubr.msk.f32.mxu1 %vm501_vm1, %v49_v28  ;;  %v3336_v23 = vpop.permute.xlu0 %1025 }
  0x9c   :  { %1824 = vperm.xlu0 %2494, %v1734_v29   ;;  %3778 = vst [vmem:[#allocation10_spill] sm:$0xff] %v3336_v23 }
  0x9d   :  { %1829 = vperm.xlu1 %2495, %v1735_v31   ;;  %v3342_v26 = vpop.permute.xlu1 %950 }
  0x9e   :  { %2467 = vmatmul.mubr.msk.f32.gmra.mxu1 %vm501_vm1, %v50_v30 }
  0x9f   :  { %2469 = vmatprep.mubr.msk.f32.mxu1 %vm501_vm1, %v51_v32  ;;  %v3346_v28 = vpop.permute.xlu0 %945 }
  0xa0   :  { %1834 = vperm.xlu0 %2494, %v1736_v33  }
  0xa1   :  { %1839 = vperm.xlu1 %2495, %v1737_v35   ;;  %v3352_v31 = vpop.permute.xlu1 %1020 }
  0xa2   :  { %2470 = vmatmul.mubr.msk.f32.gmra.mxu1 %vm501_vm1, %v52_v34 }
  0xa3   :  { %2472 = vmatprep.mubr.msk.f32.mxu1 %vm501_vm1, %v53_v36  ;;  %v3356_v33 = vpop.permute.xlu0 %1015 }
  0xa4   :  { %1844 = vperm.xlu0 %2494, %v1738_v37   ;;  %3779 = vst [vmem:[#allocation11_spill] sm:$0xff] %v3356_v33 }
  0xa5   :  { %1849 = vperm.xlu1 %2495, %v1739_v39   ;;  %v3362_v36 = vpop.permute.xlu1 %940 }
  0xa6   :  { %2473 = vmatmul.mubr.msk.f32.gmra.mxu1 %vm501_vm1, %v54_v38 }
  0xa7   :  { %2475 = vmatprep.mubr.msk.f32.mxu1 %vm501_vm1, %v55_v40  ;;  %v3366_v38 = vpop.permute.xlu0 %935 }
  0xa8   :  { %1854 = vperm.xlu0 %2494, %v1740_v41  }
  0xa9   :  { %1859 = vperm.xlu1 %2495, %v1741_v43   ;;  %v3372_v41 = vpop.permute.xlu1 %1010  ;;  %v2498_v43 = vld [vmem:[%s3769_s5 + $0x4] ss:$8 sps:$4 sm:$0xff]  }
  0xaa   :  { %2476 = vmatmul.mubr.msk.f32.gmra.mxu1 %vm501_vm1, %v56_v42  ;;  %1559 = vmatprep.mubr.bf16.mxu0 %v2498_v43 }
  0xab   :  { %2478 = vmatprep.mubr.msk.f32.mxu1 %vm501_vm1, %v57_v44  ;;  %v3379_v44 = vpop.permute.xlu0 %1005 }
  0xac   :  { %1864 = vperm.xlu0 %2494, %v1742_v45  }
  0xad   :  { %1869 = vperm.xlu1 %2495, %v1743_v47   ;;  %v931_v47 = vpop.permute.xlu1 %930 }
  0xae   :  { %2479 = vmatmul.mubr.msk.f32.gmra.mxu1 %vm501_vm1, %v58_v46 }
  0xaf   :  { %2481 = vmatprep.mubr.msk.f32.mxu1 %vm501_vm1, %v59_v48 }
  0xb0   :  { %1874 = vperm.xlu0 %2494, %v1744_v49   ;;  %v926_v49 = vpop.permute.xlu0 %925 }
  0xb1   :  { %1879 = vperm.xlu1 %2495, %v1745_v51  }
  0xb2   :  { %2482 = vmatmul.mubr.msk.f32.gmra.mxu1 %vm501_vm1, %v60_v50 }
  0xb3   :  { %2484 = vmatprep.mubr.msk.f32.mxu1 %vm501_vm1, %v61_v52  ;;  %v3391_v52 = vpop.permute.xlu1 %1000 }
  0xb4   :  { %1884 = vperm.xlu0 %2494, %v1746_v53  }
  0xb5   :  { %1889 = vperm.xlu1 %2495, %v1747_v55  }
  0xb6   :  { %2485 = vmatmul.mubr.msk.f32.gmra.mxu1 %vm501_vm1, %v62_v54  ;;  %v3395_v54 = vpop.permute.xlu0 %995 }
  0xb7   :  { %2487 = vmatprep.mubr.msk.f32.mxu1 %vm501_vm1, %v63_v56 }
  0xb8   :  { %1359 = vperm.xlu0 %2494, %v1205_v57   ;;  %v921_v57 = vpop.permute.xlu1 %920 }
  0xb9   :  { %1894 = vperm.xlu1 %2495, %v1748_v59  }
  0xba   :  { %2488 = vmatmul.mubr.msk.f32.gmra.mxu1 %vm501_vm1, %v64_v58  ;;  %v916_v59 = vpop.permute.xlu0 %915 }
  0xbb   :  { %2490 = vmatprep.mubr.msk.f32.mxu1 %vm501_vm1, %v65_v60 }
  0xbc   :  { %1364 = vperm.xlu0 %2494, %v1206_v61  }
  0xbd   :  { %1899 = vperm.xlu1 %2495, %v1749_v63  }
  0xbe   :  { %2491 = vmatmul.mubr.msk.f32.gmra.mxu1 %vm501_vm1, %v66_v62  ;;  %v3407_v62 = vpop.permute.xlu1 %990 }
  0xc0   :  { %1904 = vperm.xlu0 %2494, %v1750_v0   ;;  %v3411_v0 = vpop.permute.xlu0 %985 }
  0xc1   :  { %1909 = vperm.xlu1 %2495, %v1751_v1  }
  0xc2   :  { %v911_v4 = vpop.permute.xlu1 %910 }
  0xc4   :  { %1984 = vperm.xlu0 %2494, %v1981_v2   ;;  %v906_v13 = vpop.permute.xlu0 %905 }
 0x102   :  { %v2367_v12 = vpop.f32.mrf.mxu1 }
 0x104   :  { %v342_v14 = vpop.f32.mrf.mxu1 }
 0x106   :  { %v2370_v15 = vpop.f32.mrf.mxu1 }
 0x108   :  { %v3324_v17 = vpop.f32.mrf.mxu1 }
 0x10a   :  { %v3328_v19 = vpop.f32.mrf.mxu1 }
 0x10c   :  { %v3330_v20 = vpop.f32.mrf.mxu1 }
 0x10e   :  { %v3334_v22 = vpop.f32.mrf.mxu1 }
 0x110   :  { %v3338_v24 = vpop.f32.mrf.mxu1 }
 0x112   :  { %v3340_v25 = vpop.f32.mrf.mxu1 }
 0x114   :  { %v3344_v27 = vpop.f32.mrf.mxu1 }
 0x116   :  { %v3348_v29 = vpop.f32.mrf.mxu1 }
 0x118   :  { %v3350_v30 = vpop.f32.mrf.mxu1 }
 0x11a   :  { %v3354_v32 = vpop.f32.mrf.mxu1 }
 0x11c   :  { %v3358_v34 = vpop.f32.mrf.mxu1 }
 0x11e   :  { %v3360_v35 = vpop.f32.mrf.mxu1 }
 0x120   :  { %v3364_v37 = vpop.f32.mrf.mxu1 }
 0x122   :  { %v3368_v39 = vpop.f32.mrf.mxu1 }
 0x124   :  { %v3370_v40 = vpop.f32.mrf.mxu1 }
 0x126   :  { %v3374_v42 = vpop.f32.mrf.mxu1 }
 0x128   :  { %v3381_v45 = vpop.f32.mrf.mxu1 }
 0x12a   :  { %v3383_v46 = vpop.f32.mrf.mxu1 }
 0x12c   :  { %v3385_v48 = vpop.f32.mrf.mxu1 }
 0x12e   :  { %v3387_v50 = vpop.f32.mrf.mxu1 }
 0x130   :  { %v3389_v51 = vpop.f32.mrf.mxu1 }
 0x132   :  { %v3393_v53 = vpop.f32.mrf.mxu1 }
 0x133   :  { %3780 = vst [vmem:[#allocation12_spill] sm:$0xff] %v3393_v53 }
 0x134   :  { %v3397_v55 = vpop.f32.mrf.mxu1 }
 0x135   :  { %3781 = vst [vmem:[#allocation13_spill] sm:$0xff] %v3397_v55 }
 0x136   :  { %v3399_v56 = vpop.f32.mrf.mxu1 }
 0x137   :  { %3782 = vst [vmem:[#allocation14_spill] sm:$0xff] %v3399_v56 }
 0x138   :  { %v3401_v58 = vpop.f32.mrf.mxu1 }
 0x139   :  { %3783 = vst [vmem:[#allocation15_spill] sm:$0xff] %v3401_v58 }
 0x13a   :  { %v3403_v60 = vpop.f32.mrf.mxu1 }
 0x13b   :  { %3784 = vst [vmem:[#allocation16_spill] sm:$0xff] %v3403_v60 }
 0x13c   :  { %v3405_v61 = vpop.f32.mrf.mxu1 }
 0x13d   :  { %3785 = vst [vmem:[#allocation17_spill] sm:$0xff] %v3405_v61 }
 0x13e   :  { %v3409_v63 = vpop.f32.mrf.mxu1 }
 0x13f   :  { %3786 = vst [vmem:[#allocation18_spill] sm:$0xff] %v3409_v63 }
 0x140   :  { %v3413_v1 = vpop.f32.mrf.mxu1 }
 0x141   :  { %3787 = vst [vmem:[#allocation19_spill] sm:$0xff] %v3413_v1 }
 0x142   :  { %v2447_v2 = vpop.f32.mrf.mxu1 }
 0x143   :  { %v718_v43 = vadd.f32 %v2447_v2, %v2367_v12 }
 0x144   :  { %v712_v6 = vpop.f32.mrf.mxu1 }
 0x145   :  { %v1064_v8 = vadd.f32 %v911_v4, %v718_v43  ;;  %v713_v7 = vadd.f32 %v712_v6, %v342_v14 }
 0x146   :  { %v2450_v58 = vpop.f32.mrf.mxu1 }
 0x147   :  { %v1063_v11 = vadd.f32 %v906_v13, %v713_v7  ;;  %v728_v60 = vadd.f32 %v2450_v58, %v2370_v15  ;;  %v1096_v61 = vmax.f32 %v1064_v8, 0.0 }
 0x148   :  { %v722_v56 = vpop.f32.mrf.mxu1 }
 0x149   :  { %v1095_v23 = vmax.f32 %v1063_v11, 0.0  ;;  %v1066_v55 = vadd.f32 %v921_v57, %v728_v60  ;;  %v723_v63 = vadd.f32 %v722_v56, %v3324_v17 }
 0x14a   :  { %v2453_v21 = vpop.f32.mrf.mxu1 }
 0x14b   :  { %v1065_v53 = vadd.f32 %v916_v59, %v723_v63  ;;  %v738_v1 = vadd.f32 %v2453_v21, %v3328_v19  ;;  %v3417_v33 = vpack.c.bf16 %v1096_v61, %v1095_v23  ;;  %v1098_v2 = vmax.f32 %v1066_v55, 0.0 }
 0x14c   :  { %v732_v12 = vpop.f32.mrf.mxu1 }
 0x14d   :  { %v1097_v4 = vmax.f32 %v1065_v53, 0.0  ;;  %v1068_v6 = vadd.f32 %v931_v47, %v738_v1  ;;  %v733_v14 = vadd.f32 %v732_v12, %v3330_v20 }
 0x14e   :  { %v2456_v7 = vpop.f32.mrf.mxu1 }
 0x14f   :  { %v1067_v13 = vadd.f32 %v926_v49, %v733_v14  ;;  %v748_v8 = vadd.f32 %v2456_v7, %v3334_v22  ;;  %v3421_v11 = vpack.c.bf16 %v1098_v2, %v1097_v4  ;;  %v1100_v17 = vmax.f32 %v1068_v6, 0.0 }
 0x150   :  { %v742_v15 = vpop.f32.mrf.mxu1 }
 0x151   :  { %v1099_v56 = vmax.f32 %v1067_v13, 0.0  ;;  %v1070_v57 = vadd.f32 %v3362_v36, %v748_v8  ;;  %v743_v19 = vadd.f32 %v742_v15, %v3338_v24 }
 0x152   :  { %v2459_v21 = vpop.f32.mrf.mxu1 }
 0x153   :  { %v1069_v23 = vadd.f32 %v3366_v38, %v743_v19  ;;  %v758_v47 = vadd.f32 %v2459_v21, %v3340_v25  ;;  %v3427_v53 = vpack.c.bf16 %v1100_v17, %v1099_v56  ;;  %v1102_v49 = vmax.f32 %v1070_v57, 0.0 }
 0x154   :  { %v752_v20 = vpop.f32.mrf.mxu1 }
 0x155   :  { %v1101_v55 = vmax.f32 %v1069_v23, 0.0  ;;  %v1072_v22 = vadd.f32 %v3342_v26, %v758_v47  ;;  %v753_v58 = vadd.f32 %v752_v20, %v3344_v27 }
 0x156   :  { %v2462_v59 = vpop.f32.mrf.mxu1 }
 0x157   :  { %v1071_v60 = vadd.f32 %v3346_v28, %v753_v58  ;;  %v768_v36 = vadd.f32 %v2462_v59, %v3348_v29  ;;  %v3433_v24 = vpack.c.bf16 %v1102_v49, %v1101_v55  ;;  %v1104_v38 = vmax.f32 %v1072_v22, 0.0 }
 0x158   :  { %v762_v61 = vpop.f32.mrf.mxu1 }
 0x159   :  { %v1103_v63 = vmax.f32 %v1071_v60, 0.0  ;;  %v1074_v25 = vadd.f32 %v3322_v16, %v768_v36  ;;  %v763_v1 = vadd.f32 %v762_v61, %v3350_v30 }
 0x15a   :  { %v2465_v43 = vpop.f32.mrf.mxu1 }
 0x15b   :  { %v1073_v12 = vadd.f32 %v3326_v18, %v763_v1  ;;  %v778_v26 = vadd.f32 %v2465_v43, %v3354_v32  ;;  %v3439_v27 = vpack.c.bf16 %v1104_v38, %v1103_v63  ;;  %v1106_v28 = vmax.f32 %v1074_v25, 0.0 }
 0x15c   :  { %v772_v2 = vpop.f32.mrf.mxu1 }
 0x15d   :  { %v1105_v4 = vmax.f32 %v1073_v12, 0.0  ;;  %v1076_v29 = vadd.f32 %v3314_v9, %v778_v26  ;;  %v773_v6 = vadd.f32 %v772_v2, %v3358_v34  ;;  %v3788_v12 = vld [vmem:[#allocation11_spill] sm:$0xff]  ;;  %v3789_v2 = vld [vmem:[#allocation12_spill] sm:$0xff] }
 0x15e   :  { %v2468_v14 = vpop.f32.mrf.mxu1 }
 0x15f   :  { %v1075_v7 = vadd.f32 %v3316_v10, %v773_v6  ;;  %v788_v16 = vadd.f32 %v2468_v14, %v3360_v35  ;;  %v3445_v30 = vpack.c.bf16 %v1106_v28, %v1105_v4  ;;  %v1108_v18 = vmax.f32 %v1076_v29, 0.0 }
 0x160   :  { %v782_v13 = vpop.f32.mrf.mxu1 }
 0x161   :  { %v1107_v8 = vmax.f32 %v1075_v7, 0.0  ;;  %v1078_v32 = vadd.f32 %v3306_v5, %v788_v16  ;;  %v783_v15 = vadd.f32 %v782_v13, %v3364_v37  ;;  %v3792_v16 = vld [vmem:[#allocation10_spill] sm:$0xff] }
 0x162   :  { %v2471_v17 = vpop.f32.mrf.mxu1 }
 0x163   :  { %v1077_v56 = vadd.f32 %v3302_v3, %v783_v15  ;;  %v798_v9 = vadd.f32 %v2471_v17, %v3368_v39  ;;  %v3451_v34 = vpack.c.bf16 %v1108_v18, %v1107_v8  ;;  %v1110_v10 = vmax.f32 %v1078_v32, 0.0  ;;  %v3793_v18 = vld [vmem:[#allocation14_spill] sm:$0xff]  ;;  %v3794_v17 = vld [vmem:[#allocation7_spill] sm:$0xff] }
 0x164   :  { %v792_v57 = vpop.f32.mrf.mxu1 }
 0x165   :  { %v1109_v19 = vmax.f32 %v1077_v56, 0.0  ;;  %v1080_v35 = vadd.f32 %v3407_v62, %v798_v9  ;;  %v793_v21 = vadd.f32 %v792_v57, %v3370_v40  ;;  %v3795_v9 = vld [vmem:[#allocation15_spill] sm:$0xff] }
 0x166   :  { %v2474_v23 = vpop.f32.mrf.mxu1 }
 0x167   :  { %v1079_v47 = vadd.f32 %v3411_v0, %v793_v21  ;;  %v808_v5 = vadd.f32 %v2474_v23, %v3374_v42  ;;  %v3457_v37 = vpack.c.bf16 %v1110_v10, %v1109_v19  ;;  %v1112_v3 = vmax.f32 %v1080_v35, 0.0  ;;  %v3796_v19 = vld [vmem:[#allocation8_spill] sm:$0xff] }
 0x168   :  { %v802_v20 = vpop.f32.mrf.mxu1  ;;  %v3797_v21 = vld [vmem:[#allocation16_spill] sm:$0xff] }
 0x169   :  { %v1111_v49 = vmax.f32 %v1079_v47, 0.0  ;;  %v1082_v39 = vadd.f32 %v3391_v52, %v808_v5  ;;  %v803_v55 = vadd.f32 %v802_v20, %v3381_v45 }
 0x16a   :  { %v2477_v22 = vpop.f32.mrf.mxu1 }
 0x16b   :  { %v1081_v58 = vadd.f32 %v3395_v54, %v803_v55  ;;  %v818_v62 = vadd.f32 %v2477_v22, %v3383_v46  ;;  %v3463_v40 = vpack.c.bf16 %v1112_v3, %v1111_v49  ;;  %v1114_v0 = vmax.f32 %v1082_v39, 0.0  ;;  %v3798_v49 = vld [vmem:[#allocation5_spill] sm:$0xff] }
 0x16c   :  { %v812_v59 = vpop.f32.mrf.mxu1  ;;  %v3799_v55 = vld [vmem:[#allocation17_spill] sm:$0xff] }
 0x16d   :  { %v1113_v60 = vmax.f32 %v1081_v58, 0.0  ;;  %v1084_v42 = vadd.f32 %v3372_v41, %v818_v62  ;;  %v813_v36 = vadd.f32 %v812_v59, %v3385_v48  ;;  %v3800_v62 = vld [vmem:[#allocation6_spill] sm:$0xff] }
 0x16e   :  { %v2480_v61 = vpop.f32.mrf.mxu1 }
 0x16f   :  { %v1083_v38 = vadd.f32 %v3379_v44, %v813_v36  ;;  %v828_v52 = vadd.f32 %v2480_v61, %v3387_v50  ;;  %v1168_v45 = vpack.c.bf16 %v1114_v0, %v1113_v60  ;;  %v1116_v25 = vmax.f32 %v1084_v42, 0.0  ;;  %v3790_v44 = vld [vmem:[#allocation9_spill] sm:$0xff]  ;;  %v3801_v0 = vld [vmem:[#allocation18_spill] sm:$0xff] }
 0x170   :  { %v822_v63 = vpop.f32.mrf.mxu1  ;;  %v3791_v50 = vld [vmem:[#allocation13_spill] sm:$0xff] }
 0x171   :  { %v1115_v54 = vmax.f32 %v1083_v38, 0.0  ;;  %v1086_v46 = vadd.f32 %v3352_v31, %v828_v52  ;;  %v823_v1 = vadd.f32 %v822_v63, %v3389_v51  ;;  %v3802_v52 = vld [vmem:[#allocation19_spill] sm:$0xff] }
 0x172   :  { %v2483_v43 = vpop.f32.mrf.mxu1 }
 0x173   :  { %v1085_v26 = vadd.f32 %v3788_v12, %v823_v1  ;;  %v838_v41 = vadd.f32 %v2483_v43, %v3789_v2  ;;  %v1169_v28 = vpack.c.bf16 %v1116_v25, %v1115_v54  ;;  %v1118_v4 = vmax.f32 %v1086_v46, 0.0  ;;  %v3803_v25 = vld [vmem:[#allocation4_spill] sm:$0xff]  ;;  %v3804_v46 = vld [vmem:[#allocation3_spill] sm:$0xff] }
 0x174   :  { %v832_v48 = vpop.f32.mrf.mxu1 }
 0x175   :  { %v1117_v29 = vmax.f32 %v1085_v26, 0.0  ;;  %v1088_v6 = vadd.f32 %v3790_v44, %v838_v41  ;;  %v833_v14 = vadd.f32 %v832_v48, %v3791_v50  ;;  %v2513_v41 = vld [vmem:[%s3769_s5 + $0x50] ss:$8 sps:$4 sm:$0xff]   ;;  %v2516_v48 = vld [vmem:[%s3769_s5 + $0x60] ss:$8 sps:$4 sm:$0xff]  }
 0x176   :  { %v2486_v7 = vpop.f32.mrf.mxu1  ;;  %v2520_v44 = vld [vmem:[%s3769_s5 + $0x84] ss:$8 sps:$4 sm:$0xff]   ;;  %v2523_v50 = vld [vmem:[%s3769_s5 + $0x94] ss:$8 sps:$4 sm:$0xff]  }
 0x177   :  { %v1087_v13 = vadd.f32 %v3792_v16, %v833_v14  ;;  %v848_v31 = vadd.f32 %v2486_v7, %v3793_v18  ;;  %v1170_v8 = vpack.c.bf16 %v1118_v4, %v1117_v29  ;;  %v1120_v32 = vmax.f32 %v1088_v6, 0.0  ;;  %v2517_v4 = vld [vmem:[%s3769_s5 + $0x74] ss:$8 sps:$4 sm:$0xff]   ;;  %v2519_v29 = vld [vmem:[%s3769_s5 + $0x70] ss:$8 sps:$4 sm:$0xff]  }
 0x178   :  { %v842_v51 = vpop.f32.mrf.mxu1  ;;  %v2522_v6 = vld [vmem:[%s3769_s5 + $0x80] ss:$8 sps:$4 sm:$0xff]   ;;  %v2525_v14 = vld [vmem:[%s3769_s5 + $0x90] ss:$8 sps:$4 sm:$0xff]   ;;  %v2526_v7 = vld [vmem:[%s3769_s5 + $0xa4] ss:$8 sps:$4 sm:$0xff]  }
 0x179   :  { %v1119_v15 = vmax.f32 %v1087_v13, 0.0  ;;  %v1090_v56 = vadd.f32 %v3794_v17, %v848_v31  ;;  %v843_v57 = vadd.f32 %v842_v51, %v3795_v9  ;;  %v2528_v16 = vld [vmem:[%s3769_s5 + $0xa0] ss:$8 sps:$4 sm:$0xff]   ;;  %v2529_v13 = vld [vmem:[%s3769_s5 + $0xb4] ss:$8 sps:$4 sm:$0xff]  }
 0x17a   :  { %v2489_v10 = vpop.f32.mrf.mxu1  ;;  %v2531_v18 = vld [vmem:[%s3769_s5 + $0xb0] ss:$8 sps:$4 sm:$0xff]   ;;  %v2532_v31 = vld [vmem:[%s3769_s5 + $0xc4] ss:$8 sps:$4 sm:$0xff]   ;;  %v2535_v51 = vld [vmem:[%s3769_s5 + $0xd4] ss:$8 sps:$4 sm:$0xff]  }
 0x17b   :  { %v1089_v35 = vadd.f32 %v3796_v19, %v843_v57  ;;  %v858_v23 = vadd.f32 %v2489_v10, %v3797_v21  ;;  %v1171_v47 = vpack.c.bf16 %v1120_v32, %v1119_v15  ;;  %v1122_v20 = vmax.f32 %v1090_v56, 0.0  ;;  %v2537_v32 = vld [vmem:[%s3769_s5 + $0xd0] ss:$8 sps:$4 sm:$0xff]   ;;  %v2538_v15 = vld [vmem:[%s3769_s5 + $0xe4] ss:$8 sps:$4 sm:$0xff]   ;;  %v3590_v57 = vpop.permute.xlu0 %1209  ;;  %v3592_v10 = vpop.permute.xlu1 %1214 }
 0x17c   :  { %v852_v5 = vpop.f32.mrf.mxu1  ;;  %v2540_v17 = vld [vmem:[%s3769_s5 + $0xe0] ss:$8 sps:$4 sm:$0xff]   ;;  %v2541_v56 = vld [vmem:[%s3769_s5 + $0xf4] ss:$8 sps:$4 sm:$0xff]   ;;  %v2543_v9 = vld [vmem:[%s3769_s5 + $0xf0] ss:$8 sps:$4 sm:$0xff]  }
 0x17d   :  { %v1121_v3 = vmax.f32 %v1089_v35, 0.0  ;;  %v1092_v39 = vadd.f32 %v3798_v49, %v858_v23  ;;  %v853_v22 = vadd.f32 %v852_v5, %v3799_v55 }
 0x17e   :  { %v2492_v58 = vpop.f32.mrf.mxu1 }
 0x17f   :  { %v1091_v59 = vadd.f32 %v3800_v62, %v853_v22  ;;  %v868_v60 = vadd.f32 %v2492_v58, %v3801_v0  ;;  %v1172_v42 = vpack.c.bf16 %v1122_v20, %v1121_v3  ;;  %v1124_v61 = vmax.f32 %v1092_v39, 0.0  ;;  %v3594_v19 = vpop.permute.xlu0 %1219  ;;  %v3596_v35 = vpop.permute.xlu1 %1224 }
 0x180   :  { %v862_v36 = vpop.f32.mrf.mxu1 }
 0x181   :  { %v1123_v38 = vmax.f32 %v1091_v59, 0.0  ;;  %v863_v63 = vadd.f32 %v862_v36, %v3802_v52  ;;  %v1094_v54 = vadd.f32 %v3803_v25, %v868_v60 }
 0x183   :  { %v1093_v1 = vadd.f32 %v3804_v46, %v863_v63  ;;  %v1173_v43 = vpack.c.bf16 %v1124_v61, %v1123_v38  ;;  %v1126_v26 = vmax.f32 %v1094_v54, 0.0  ;;  %v3598_v21 = vpop.permute.xlu0 %1229  ;;  %v3600_v23 = vpop.permute.xlu1 %1234 }
 0x185   :  { %v1125_v12 = vmax.f32 %v1093_v1, 0.0 }
 0x187   :  { %v1174_v2 = vpack.c.bf16 %v1126_v26, %v1125_v12  ;;  %v3604_v5 = vpop.permute.xlu1 %1244 }
 0x189   :  { %2221 = vmatprep.subr.bf16.mxu0 %v1174_v2 }
 0x18a   :  { %2222 = vmatpush3.bf16.msra.mxu0 %v3457_v37  ;;  %v2508_v37 = vld [vmem:[%s3769_s5 + $0x44] ss:$8 sps:$4 sm:$0xff]  }
 0x18b   :  { %2223 = vmatprep.subr.bf16.mxu0 %v1173_v43  ;;  %v3608_v3 = vpop.permute.xlu1 %1254 }
 0x18e   :  { %2224 = vmatpush3.bf16.msra.mxu0 %v3451_v34  ;;  %v2496_v34 = vld [vmem:[%s3769_s5] ss:$8 sps:$4 sm:$0xff]  }
 0x18f   :  { %2225 = vmatprep.subr.bf16.mxu0 %v1172_v42  ;;  %v3612_v39 = vpop.permute.xlu1 %1264 }
 0x192   :  { %2226 = vmatpush3.bf16.msra.mxu0 %v3445_v30  ;;  %v2507_v30 = vld [vmem:[%s3769_s5 + $0x30] ss:$8 sps:$4 sm:$0xff]  }
 0x193   :  { %2227 = vmatprep.subr.bf16.mxu0 %v1171_v47  ;;  %v3602_v47 = vpop.permute.xlu0 %1239  ;;  %v3616_v22 = vpop.permute.xlu1 %1274 }
 0x196   :  { %2228 = vmatpush3.bf16.msra.mxu0 %v3439_v27  ;;  %v2499_v27 = vld [vmem:[%s3769_s5 + $0x14] ss:$8 sps:$4 sm:$0xff]  }
 0x197   :  { %2229 = vmatprep.subr.bf16.mxu0 %v1170_v8  ;;  %v2534_v8 = vld [vmem:[%s3769_s5 + $0xc0] ss:$8 sps:$4 sm:$0xff]   ;;  %v3606_v20 = vpop.permute.xlu0 %1249  ;;  %v3620_v62 = vpop.permute.xlu1 %1284 }
 0x198   :  { %3806 = vst [vmem:[#allocation12_spill] sm:$0xff] %v3620_v62 }
 0x19a   :  { %2230 = vmatpush3.bf16.msra.mxu0 %v3433_v24  ;;  %v2505_v24 = vld [vmem:[%s3769_s5 + $0x34] ss:$8 sps:$4 sm:$0xff]  }
 0x19b   :  { %2231 = vmatprep.subr.bf16.mxu0 %v1169_v28  ;;  %v2514_v28 = vld [vmem:[%s3769_s5 + $0x64] ss:$8 sps:$4 sm:$0xff]   ;;  %v3610_v49 = vpop.permute.xlu0 %1259  ;;  %v3624_v0 = vpop.permute.xlu1 %1294 }
 0x19c   :  { %3808 = vst [vmem:[#allocation13_spill] sm:$0xff] %v3624_v0 }
 0x19e   :  { %2232 = vmatpush3.bf16.msra.mxu0 %v3427_v53  ;;  %v2501_v53 = vld [vmem:[%s3769_s5 + $0x10] ss:$8 sps:$4 sm:$0xff]  }
 0x19f   :  { %2233 = vmatprep.subr.bf16.mxu0 %v1168_v45  ;;  %v2511_v45 = vld [vmem:[%s3769_s5 + $0x54] ss:$8 sps:$4 sm:$0xff]   ;;  %v3614_v55 = vpop.permute.xlu0 %1269  ;;  %v3628_v42 = vpop.permute.xlu1 %1304 }
 0x1a0   :  { %3810 = vst [vmem:[#allocation14_spill] sm:$0xff] %v3628_v42 }
 0x1a2   :  { %2234 = vmatpush3.bf16.msra.mxu0 %v3421_v11  ;;  %v2502_v11 = vld [vmem:[%s3769_s5 + $0x24] ss:$8 sps:$4 sm:$0xff]  }
 0x1a3   :  { %2235 = vmatprep.subr.bf16.mxu0 %v3463_v40  ;;  %v2510_v40 = vld [vmem:[%s3769_s5 + $0x40] ss:$8 sps:$4 sm:$0xff]   ;;  %v3618_v58 = vpop.permute.xlu0 %1279  ;;  %v3632_v25 = vpop.permute.xlu1 %1314 }
 0x1a4   :  { %3805 = vst [vmem:[#allocation11_spill] sm:$0xff] %v3618_v58  ;;  %3812 = vst [vmem:[#allocation15_spill] sm:$0xff] %v3632_v25 }
 0x1a6   :  { %2236 = vmatpush3.bf16.msra.mxu0 %v3417_v33  ;;  %v2504_v33 = vld [vmem:[%s3769_s5 + $0x20] ss:$8 sps:$4 sm:$0xff]  }
 0x1a7   :  { %v3622_v59 = vpop.permute.xlu0 %1289  ;;  %v3636_v12 = vpop.permute.xlu1 %1324 }
 0x1a8   :  { %3807 = vst [vmem:[#allocation9_spill] sm:$0xff] %v3622_v59  ;;  %3814 = vst [vmem:[#allocation16_spill] sm:$0xff] %v3636_v12 }
 0x1a9   :  { %1560 = vmatmul.mubr.bf16.vlgmr.msra.gmra.mxu0 %v2496_v34 }
 0x1aa   :  { %1567 = vmatprep.mubr.bf16.mxu0 %v2499_v27 }
 0x1ab   :  { %v3626_v60 = vpop.permute.xlu0 %1299 }
 0x1ac   :  { %3809 = vst [vmem:[#allocation10_spill] sm:$0xff] %v3626_v60 }
 0x1af   :  { %v3630_v61 = vpop.permute.xlu0 %1309 }
 0x1b0   :  { %3811 = vst [vmem:[#allocation7_spill] sm:$0xff] %v3630_v61 }
 0x1b1   :  { %1568 = vmatmul.mubr.bf16.gmra.mxu0 %v2501_v53  ;;  %v3640_v53 = vpop.permute.xlu1 %1334 }
 0x1b2   :  { %1575 = vmatprep.mubr.bf16.mxu0 %v2502_v11  ;;  %3816 = vst [vmem:[#allocation17_spill] sm:$0xff] %v3640_v53 }
 0x1b3   :  { %v3634_v46 = vpop.permute.xlu0 %1319 }
 0x1b4   :  { %3813 = vst [vmem:[#allocation8_spill] sm:$0xff] %v3634_v46 }
 0x1b7   :  { %v3638_v2 = vpop.permute.xlu0 %1329 }
 0x1b8   :  { %3815 = vst [vmem:[#allocation5_spill] sm:$0xff] %v3638_v2 }
 0x1b9   :  { %1576 = vmatmul.mubr.bf16.gmra.mxu0 %v2504_v33 }
 0x1ba   :  { %1583 = vmatprep.mubr.bf16.mxu0 %v2505_v24 }
 0x1bb   :  { %v3642_v33 = vpop.permute.xlu0 %1339 }
 0x1bc   :  { %3817 = vst [vmem:[#allocation6_spill] sm:$0xff] %v3642_v33 }
 0x1c1   :  { %1584 = vmatmul.mubr.bf16.gmra.mxu0 %v2507_v30 }
 0x1c2   :  { %1591 = vmatprep.mubr.bf16.mxu0 %v2508_v37  ;;  %v3644_v37 = vpop.permute.xlu1 %1344 }
 0x1c3   :  { %3818 = vst [vmem:[#allocation18_spill] sm:$0xff] %v3644_v37 }
 0x1c9   :  { %1592 = vmatmul.mubr.bf16.gmra.mxu0 %v2510_v40 }
 0x1ca   :  { %1599 = vmatprep.mubr.bf16.mxu0 %v2511_v45  ;;  %v3646_v45 = vpop.permute.xlu0 %1349 }
 0x1cb   :  { %3819 = vst [vmem:[#allocation19_spill] sm:$0xff] %v3646_v45 }
 0x1d1   :  { %1600 = vmatmul.mubr.bf16.gmra.mxu0 %v2513_v41 }
 0x1d2   :  { %1607 = vmatprep.mubr.bf16.mxu0 %v2514_v28 }
 0x1d9   :  { %1608 = vmatmul.mubr.bf16.gmra.mxu0 %v2516_v48  ;;  %v3648_v48 = vpop.permute.xlu1 %1354 }
 0x1da   :  { %1615 = vmatprep.mubr.bf16.mxu0 %v2517_v4  ;;  %3820 = vst [vmem:[#allocation4_spill] sm:$0xff] %v3648_v48 }
 0x1e1   :  { %1616 = vmatmul.mubr.bf16.gmra.mxu0 %v2519_v29  ;;  %v1755_v29 = vpop.permute.xlu0 %1754 }
 0x1e2   :  { %1623 = vmatprep.mubr.bf16.mxu0 %v2520_v44 }
 0x1e9   :  { %1624 = vmatmul.mubr.bf16.gmra.mxu0 %v2522_v6 }
 0x1ea   :  { %1631 = vmatprep.mubr.bf16.mxu0 %v2523_v50  ;;  %v1760_v50 = vpop.permute.xlu1 %1759 }
 0x1f1   :  { %1632 = vmatmul.mubr.bf16.gmra.mxu0 %v2525_v14 }
 0x1f2   :  { %1639 = vmatprep.mubr.bf16.mxu0 %v2526_v7  ;;  %v1765_v7 = vpop.permute.xlu0 %1764 }
 0x1f9   :  { %1640 = vmatmul.mubr.bf16.gmra.mxu0 %v2528_v16 }
 0x1fa   :  { %1647 = vmatprep.mubr.bf16.mxu0 %v2529_v13 }
 0x201   :  { %1648 = vmatmul.mubr.bf16.gmra.mxu0 %v2531_v18  ;;  %v1770_v18 = vpop.permute.xlu1 %1769 }
 0x202   :  { %1655 = vmatprep.mubr.bf16.mxu0 %v2532_v31 }
 0x209   :  { %1656 = vmatmul.mubr.bf16.gmra.mxu0 %v2534_v8  ;;  %v1775_v8 = vpop.permute.xlu0 %1774 }
 0x20a   :  { %1663 = vmatprep.mubr.bf16.mxu0 %v2535_v51 }
 0x211   :  { %1664 = vmatmul.mubr.bf16.gmra.mxu0 %v2537_v32 }
 0x212   :  { %1671 = vmatprep.mubr.bf16.mxu0 %v2538_v15  ;;  %v1780_v15 = vpop.permute.xlu1 %1779 }
 0x219   :  { %1672 = vmatmul.mubr.bf16.gmra.mxu0 %v2540_v17 }
 0x21a   :  { %1679 = vmatprep.mubr.bf16.mxu0 %v2541_v56  ;;  %v3656_v56 = vpop.permute.xlu0 %1784 }
 0x21e   :  { %v3666_v45 = vpop.permute.xlu0 %1794 }
 0x221   :  { %1680 = vmatmul.mubr.bf16.gmra.mxu0 %v2543_v9 }
 0x222   :  { %v3677_v42 = vpop.permute.xlu0 %1804 }
 0x269   :  { %v2237_v36 = vpop.f32.mrf.mxu0 }
 0x26b   :  { %v2238_v38 = vpop.f32.mrf.mxu0 }
 0x26c   :  { %v2239_v52 = vadd.f32 %v2238_v38, %v2237_v36  ;;  %v3662_v38 = vpop.permute.xlu1 %1789 }
 0x26d   :  { %v2240_v63 = vpop.f32.mrf.mxu0 }
 0x26e   :  { %v1562_v60 = vadd.f32 %v2239_v52, %v3590_v57  ;;  %v3691_v52 = vpop.permute.xlu0 %1814 }
 0x26f   :  { %v2241_v54 = vpop.f32.mrf.mxu0 }
 0x270   :  { %v2242_v37 = vadd.f32 %v2241_v54, %v2240_v63  ;;  %v3672_v12 = vpop.permute.xlu1 %1799 }
 0x271   :  { %v2243_v1 = vpop.f32.mrf.mxu0 }
 0x272   :  { %v1565_v46 = vadd.f32 %v2242_v37, %v3592_v10  ;;  %v1688_v10 = vmax.f32 %v1562_v60, 0.0 }
 0x273   :  { %v2244_v43 = vpop.f32.mrf.mxu0 }
 0x274   :  { %v2245_v53 = vadd.f32 %v2244_v43, %v2243_v1  ;;  %v1689_v54 = vmax.f32 %v1565_v46, 0.0  ;;  %v3686_v58 = vpop.permute.xlu1 %1809 }
 0x275   :  { %v2246_v26 = vpop.f32.mrf.mxu0 }
 0x276   :  { %v1570_v0 = vadd.f32 %v2245_v53, %v3594_v19  ;;  %v1913_v19 = vmul.f32 %v1760_v50, %v1689_v54 }
 0x277   :  { %v2247_v34 = vpop.f32.mrf.mxu0 }
 0x278   :  { %v2248_v25 = vadd.f32 %v2247_v34, %v2246_v26  ;;  %v1690_v26 = vmax.f32 %v1570_v0, 0.0 }
 0x279   :  { %v2249_v27 = vpop.f32.mrf.mxu0 }
 0x27a   :  { %v1573_v1 = vadd.f32 %v2248_v25, %v3596_v35  ;;  %v1912_v25 = vmul.f32 %v1755_v29, %v1688_v10 }
 0x27b   :  { %v2250_v11 = vpop.f32.mrf.mxu0 }
 0x27c   :  { %v2251_v59 = vadd.f32 %v2250_v11, %v2249_v27  ;;  %v1691_v27 = vmax.f32 %v1573_v1, 0.0  ;;  %v1914_v11 = vmul.f32 %v1765_v7, %v1690_v26  ;;  %v1944_v60 = vadd.f32 %v1913_v19, %v1912_v25  ;;  %v3704_v1 = vpop.permute.xlu0 %1824 }
 0x27d   :  { %v2252_v24 = vpop.f32.mrf.mxu0 }
 0x27e   :  { %v1578_v34 = vadd.f32 %v2251_v59, %v3598_v21  ;;  %v3699_v59 = vpop.permute.xlu1 %1819 }
 0x27f   :  { %v2253_v30 = vpop.f32.mrf.mxu0 }
 0x280   :  { %v2254_v43 = vadd.f32 %v2253_v30, %v2252_v24  ;;  %v1692_v24 = vmax.f32 %v1578_v34, 0.0 }
 0x281   :  { %v2255_v40 = vpop.f32.mrf.mxu0 }
 0x282   :  { %v1581_v46 = vadd.f32 %v2254_v43, %v3600_v23 }
 0x283   :  { %v2256_v41 = vpop.f32.mrf.mxu0 }
 0x284   :  { %v2257_v57 = vadd.f32 %v2256_v41, %v2255_v40  ;;  %v1915_v40 = vmul.f32 %v1770_v18, %v1691_v27  ;;  %v1693_v41 = vmax.f32 %v1581_v46, 0.0 }
 0x285   :  { %v2258_v28 = vpop.f32.mrf.mxu0 }
 0x286   :  { %v1586_v0 = vadd.f32 %v2257_v57, %v3602_v47 }
 0x287   :  { %v2259_v4 = vpop.f32.mrf.mxu0 }
 0x288   :  { %v2260_v35 = vadd.f32 %v2259_v4, %v2258_v28  ;;  %v1945_v28 = vadd.f32 %v1944_v60, %v1914_v11  ;;  %v1916_v4 = vmul.f32 %v1775_v8, %v1692_v24  ;;  %v1694_v7 = vmax.f32 %v1586_v0, 0.0 }
 0x289   :  { %v2261_v44 = vpop.f32.mrf.mxu0 }
 0x28a   :  { %v1589_v23 = vadd.f32 %v2260_v35, %v3604_v5  ;;  %v3710_v5 = vpop.permute.xlu1 %1829  ;;  %v1918_v8 = vmul.f32 %v3656_v56, %v1694_v7 }
 0x28b   :  { %v2262_v6 = vpop.f32.mrf.mxu0 }
 0x28c   :  { %v2263_v21 = vadd.f32 %v2262_v6, %v2261_v44  ;;  %v1946_v44 = vadd.f32 %v1945_v28, %v1915_v40  ;;  %v1917_v6 = vmul.f32 %v1780_v15, %v1693_v41  ;;  %v1695_v26 = vmax.f32 %v1589_v23, 0.0  ;;  %v3821_v40 = vld [vmem:[#allocation11_spill] sm:$0xff]  ;;  %v3822_v28 = vld [vmem:[#allocation12_spill] sm:$0xff] }
 0x28d   :  { %v2264_v14 = vpop.f32.mrf.mxu0 }
 0x28e   :  { %v1594_v43 = vadd.f32 %v2263_v21, %v3606_v20 }
 0x28f   :  { %v2265_v16 = vpop.f32.mrf.mxu0 }
 0x290   :  { %v2266_v54 = vadd.f32 %v2265_v16, %v2264_v14  ;;  %v1947_v14 = vadd.f32 %v1946_v44, %v1916_v4  ;;  %v1696_v57 = vmax.f32 %v1594_v43, 0.0  ;;  %v3823_v44 = vld [vmem:[#allocation9_spill] sm:$0xff] }
 0x291   :  { %v2267_v13 = vpop.f32.mrf.mxu0 }
 0x292   :  { %v1597_v18 = vadd.f32 %v2266_v54, %v3608_v3  ;;  %v1919_v3 = vmul.f32 %v3662_v38, %v1695_v26  ;;  %v1920_v35 = vmul.f32 %v3666_v45, %v1696_v57 }
 0x293   :  { %v2268_v31 = vpop.f32.mrf.mxu0 }
 0x294   :  { %v2269_v47 = vadd.f32 %v2268_v31, %v2267_v13  ;;  %v3716_v13 = vpop.permute.xlu0 %1834  ;;  %v1948_v31 = vadd.f32 %v1947_v14, %v1917_v6  ;;  %v1697_v27 = vmax.f32 %v1597_v18, 0.0 }
 0x295   :  { %v3650_v51 = vpop.f32.mrf.mxu0 }
 0x296   :  { %v1602_v19 = vadd.f32 %v2269_v47, %v3610_v49  ;;  %v1949_v56 = vadd.f32 %v1948_v31, %v1918_v8  ;;  %v1921_v38 = vmul.f32 %v3672_v12, %v1697_v27 }
 0x297   :  { %v3652_v32 = vpop.f32.mrf.mxu0 }
 0x298   :  { %v2272_v34 = vadd.f32 %v3652_v32, %v3650_v51  ;;  %v1698_v49 = vmax.f32 %v1602_v19, 0.0  ;;  %v1950_v24 = vadd.f32 %v1949_v56, %v1919_v3  ;;  %v1845_v21 = vpop.permute.xlu0 %1844 }
 0x299   :  { %v3654_v17 = vpop.f32.mrf.mxu0 }
 0x29a   :  { %v1605_v51 = vadd.f32 %v2272_v34, %v3612_v39  ;;  %v1951_v45 = vadd.f32 %v1950_v24, %v1920_v35  ;;  %v1922_v60 = vmul.f32 %v3677_v42, %v1698_v49  ;;  %v3824_v34 = vld [vmem:[#allocation13_spill] sm:$0xff] }
 0x29b   :  { %v3658_v9 = vpop.f32.mrf.mxu0 }
 0x29c   :  { %v2275_v20 = vadd.f32 %v3658_v9, %v3654_v17  ;;  %v1840_v17 = vpop.permute.xlu1 %1839  ;;  %v1699_v0 = vmax.f32 %v1605_v51, 0.0  ;;  %v1952_v23 = vadd.f32 %v1951_v45, %v1921_v38  ;;  %v1855_v43 = vpop.permute.xlu0 %1854 }
 0x29d   :  { %v3660_v36 = vpop.f32.mrf.mxu0 }
 0x29e   :  { %v1610_v25 = vadd.f32 %v2275_v20, %v3614_v55  ;;  %v1923_v12 = vmul.f32 %v3686_v58, %v1699_v0  ;;  %v1953_v7 = vadd.f32 %v1952_v23, %v1922_v60  ;;  %v3825_v20 = vld [vmem:[#allocation10_spill] sm:$0xff] }
 0x29f   :  { %v3664_v48 = vpop.f32.mrf.mxu0 }
 0x2a0   :  { %v2278_v32 = vadd.f32 %v3664_v48, %v3660_v36  ;;  %v1700_v55 = vmax.f32 %v1610_v25, 0.0  ;;  %v1954_v26 = vadd.f32 %v1953_v7, %v1923_v12 }
 0x2a1   :  { %v3668_v33 = vpop.f32.mrf.mxu0 }
 0x2a2   :  { %v1613_v39 = vadd.f32 %v2278_v32, %v3616_v22  ;;  %v1850_v22 = vpop.permute.xlu1 %1849  ;;  %v1924_v42 = vmul.f32 %v3691_v52, %v1700_v55 }
 0x2a3   :  { %v3670_v2 = vpop.f32.mrf.mxu0 }
 0x2a4   :  { %v2281_v9 = vadd.f32 %v3670_v2, %v3668_v33  ;;  %v1701_v54 = vmax.f32 %v1613_v39, 0.0 }
 0x2a5   :  { %v3675_v61 = vpop.f32.mrf.mxu0 }
 0x2a6   :  { %v1618_v41 = vadd.f32 %v2281_v9, %v3821_v40  ;;  %v1925_v58 = vmul.f32 %v3699_v59, %v1701_v54  ;;  %v3826_v59 = vld [vmem:[#allocation14_spill] sm:$0xff]  ;;  %v3827_v9 = vld [vmem:[#allocation7_spill] sm:$0xff] }
 0x2a7   :  { %v3681_v63 = vpop.f32.mrf.mxu0 }
 0x2a8   :  { %v2284_v48 = vadd.f32 %v3681_v63, %v3675_v61  ;;  %v1702_v47 = vmax.f32 %v1618_v41, 0.0 }
 0x2a9   :  { %v3684_v62 = vpop.f32.mrf.mxu0 }
 0x2aa   :  { %v1621_v4 = vadd.f32 %v2284_v48, %v3822_v28  ;;  %v1926_v19 = vmul.f32 %v3704_v1, %v1702_v47  ;;  %v3828_v48 = vld [vmem:[#allocation15_spill] sm:$0xff] }
 0x2ab   :  { %v3689_v37 = vpop.f32.mrf.mxu0 }
 0x2ac   :  { %v2287_v2 = vadd.f32 %v3689_v37, %v3684_v62  ;;  %v1703_v18 = vmax.f32 %v1621_v4, 0.0  ;;  %v3830_v4 = vld [vmem:[#allocation16_spill] sm:$0xff] }
 0x2ad   :  { %v3694_v53 = vpop.f32.mrf.mxu0 }
 0x2ae   :  { %v1626_v6 = vadd.f32 %v2287_v2, %v3823_v44  ;;  %v3829_v2 = vld [vmem:[#allocation8_spill] sm:$0xff] }
 0x2af   :  { %v3696_v30 = vpop.f32.mrf.mxu0 }
 0x2b0   :  { %v2290_v61 = vadd.f32 %v3696_v30, %v3694_v53  ;;  %v1955_v53 = vadd.f32 %v1954_v26, %v1924_v42  ;;  %v1860_v30 = vpop.permute.xlu1 %1859  ;;  %v1704_v52 = vmax.f32 %v1626_v6, 0.0  ;;  %v3831_v6 = vld [vmem:[#allocation5_spill] sm:$0xff] }
 0x2b1   :  { %v3701_v50 = vpop.f32.mrf.mxu0 }
 0x2b2   :  { %v1629_v14 = vadd.f32 %v2290_v61, %v3824_v34  ;;  %v1956_v51 = vadd.f32 %v1955_v53, %v1925_v58 }
 0x2b3   :  { %v2292_v29 = vpop.f32.mrf.mxu0 }
 0x2b4   :  { %v2293_v62 = vadd.f32 %v2292_v29, %v3701_v50  ;;  %v1865_v50 = vpop.permute.xlu0 %1864  ;;  %v1927_v29 = vmul.f32 %v3710_v5, %v1703_v18  ;;  %v1705_v32 = vmax.f32 %v1629_v14, 0.0  ;;  %v1870_v0 = vpop.permute.xlu1 %1869  ;;  %v3832_v14 = vld [vmem:[#allocation17_spill] sm:$0xff] }
 0x2b5   :  { %v2294_v10 = vpop.f32.mrf.mxu0 }
 0x2b6   :  { %v1634_v31 = vadd.f32 %v2293_v62, %v3825_v20  ;;  %v3833_v20 = vld [vmem:[#allocation6_spill] sm:$0xff] }
 0x2b7   :  { %v2295_v16 = vpop.f32.mrf.mxu0 }
 0x2b8   :  { %v2296_v8 = vadd.f32 %v2295_v16, %v2294_v10  ;;  %v1957_v10 = vadd.f32 %v1956_v51, %v1926_v19  ;;  %v1928_v16 = vmul.f32 %v3716_v13, %v1704_v52  ;;  %v1706_v25 = vmax.f32 %v1634_v31, 0.0  ;;  %v1875_v55 = vpop.permute.xlu0 %1874 }
 0x2b9   :  { %v2297_v15 = vpop.f32.mrf.mxu0 }
 0x2ba   :  { %v1637_v56 = vadd.f32 %v2296_v8, %v3826_v59 }
 0x2bb   :  { %v2298_v46 = vpop.f32.mrf.mxu0 }
 0x2bc   :  { %v2299_v3 = vadd.f32 %v2298_v46, %v2297_v15  ;;  %v1958_v15 = vadd.f32 %v1957_v10, %v1927_v29  ;;  %v1929_v46 = vmul.f32 %v1840_v17, %v1705_v32  ;;  %v1707_v39 = vmax.f32 %v1637_v56, 0.0  ;;  %v3834_v32 = vld [vmem:[#allocation18_spill] sm:$0xff] }
 0x2bd   :  { %v2300_v11 = vpop.f32.mrf.mxu0 }
 0x2be   :  { %v1642_v1 = vadd.f32 %v2299_v3, %v3827_v9  ;;  %v1959_v40 = vadd.f32 %v1958_v15, %v1928_v16  ;;  %v1931_v54 = vmul.f32 %v1850_v22, %v1707_v39 }
 0x2bf   :  { %v2301_v36 = vpop.f32.mrf.mxu0 }
 0x2c0   :  { %v2302_v35 = vadd.f32 %v2301_v36, %v2300_v11  ;;  %v1930_v11 = vmul.f32 %v1845_v21, %v1706_v25  ;;  %v1708_v36 = vmax.f32 %v1642_v1, 0.0  ;;  %v1960_v12 = vadd.f32 %v1959_v40, %v1929_v46  ;;  %v3835_v25 = vld [vmem:[#allocation19_spill] sm:$0xff] }
 0x2c1   :  { %v2303_v33 = vpop.f32.mrf.mxu0 }
 0x2c2   :  { %v1645_v45 = vadd.f32 %v2302_v35, %v3828_v48  ;;  %v1961_v7 = vadd.f32 %v1960_v12, %v1930_v11  ;;  %v1932_v42 = vmul.f32 %v1855_v43, %v1708_v36 }
 0x2c3   :  { %v2304_v63 = vpop.f32.mrf.mxu0 }
 0x2c4   :  { %v2305_v38 = vadd.f32 %v2304_v63, %v2303_v33  ;;  %v1709_v28 = vmax.f32 %v1645_v45, 0.0  ;;  %v1880_v63 = vpop.permute.xlu1 %1879  ;;  %v1962_v26 = vadd.f32 %v1961_v7, %v1931_v54 }
 0x2c5   :  { %v2306_v37 = vpop.f32.mrf.mxu0 }
 0x2c6   :  { %v1650_v13 = vadd.f32 %v2305_v38, %v3829_v2  ;;  %v1933_v58 = vmul.f32 %v1860_v30, %v1709_v28 }
 0x2c7   :  { %v2307_v57 = vpop.f32.mrf.mxu0 }
 0x2c8   :  { %v2308_v60 = vadd.f32 %v2307_v57, %v2306_v37  ;;  %v1710_v44 = vmax.f32 %v1650_v13, 0.0  ;;  %v1885_v37 = vpop.permute.xlu0 %1884  ;;  %v1963_v57 = vadd.f32 %v1962_v26, %v1932_v42  ;;  %v1890_v43 = vpop.permute.xlu1 %1889 }
 0x2c9   :  { %v2309_v27 = vpop.f32.mrf.mxu0 }
 0x2ca   :  { %v1653_v61 = vadd.f32 %v2308_v60, %v3830_v4  ;;  %v1934_v19 = vmul.f32 %v1865_v50, %v1710_v44  ;;  %v1964_v3 = vadd.f32 %v1963_v57, %v1933_v58  ;;  %v1987_v58 = vlaneseq }
 0x2cb   :  { %v2310_v49 = vpop.f32.mrf.mxu0 }
 0x2cc   :  { %v2311_v23 = vadd.f32 %v2310_v49, %v2309_v27  ;;  %v1711_v34 = vmax.f32 %v1653_v61, 0.0  ;;  %v1360_v30 = vpop.permute.xlu0 %1359  ;;  %v1965_v49 = vadd.f32 %v1964_v3, %v1934_v19  ;;  %v1895_v46 = vpop.permute.xlu1 %1894 }
 0x2cd   :  { %v2312_v24 = vpop.f32.mrf.mxu0 }
 0x2ce   :  { %v1658_v62 = vadd.f32 %v2311_v23, %v3831_v6  ;;  %v1935_v51 = vmul.f32 %v1870_v0, %v1711_v34 }
 0x2cf   :  { %v2313_v5 = vpop.f32.mrf.mxu0 }
 0x2d0   :  { %v2314_v17 = vadd.f32 %v2313_v5, %v2312_v24  ;;  %v1712_v52 = vmax.f32 %v1658_v62, 0.0  ;;  %v1966_v50 = vadd.f32 %v1965_v49, %v1935_v51  ;;  %v3836_v5 = vld [vmem:[#allocation4_spill] sm:$0xff]  ;;  %v1365_v40 = vpop.permute.xlu0 %1364  ;;  %v1900_v28 = vpop.permute.xlu1 %1899 }
 0x2d1   :  { %v2315_v41 = vpop.f32.mrf.mxu0 }
 0x2d2   :  { %v1661_v22 = vadd.f32 %v2314_v17, %v3832_v14  ;;  %v1936_v10 = vmul.f32 %v1875_v55, %v1712_v52  ;;  %v1988_v14 = vshrl.u32 %v1987_v58, 7 }
 0x2d3   :  { %v2316_v33 = vpop.f32.mrf.mxu0 }
 0x2d4   :  { %v2317_v21 = vadd.f32 %v2316_v33, %v2315_v41  ;;  %v1713_v29 = vmax.f32 %v1661_v22, 0.0  ;;  %v1967_v48 = vadd.f32 %v1966_v50, %v1936_v10  ;;  %v1905_v7 = vpop.permute.xlu0 %1904  ;;  %v1989_v57 = vsub.s32 0, %v1988_v14 }
 0x2d5   :  { %v2318_v47 = vpop.f32.mrf.mxu0 }
 0x2d6   :  { %v1666_v31 = vadd.f32 %v2317_v21, %v3833_v20  ;;  %v1937_v24 = vmul.f32 %v1880_v63, %v1713_v29  ;;  %v1910_v21 = vpop.permute.xlu1 %1909 }
 0x2d7   :  { %v2319_v18 = vpop.f32.mrf.mxu0 }
 0x2d8   :  { %v2320_v8 = vadd.f32 %v2319_v18, %v2318_v47  ;;  %v1714_v16 = vmax.f32 %v1666_v31, 0.0  ;;  %v1968_v36 = vadd.f32 %v1967_v48, %v1937_v24  ;;  %v1985_v19 = vpop.permute.xlu0 %1984 }
 0x2d9   :  { %v2321_v53 = vpop.f32.mrf.mxu0  ;;  %v1990_v20 = vrot.slane %v1985_v19, %v1989_v57 }
 0x2da   :  { %v1669_v59 = vadd.f32 %v2320_v8, %v3834_v32  ;;  %v1938_v0 = vmul.f32 %v1885_v37, %v1714_v16 }
 0x2db   :  { %v2322_v27 = vpop.f32.mrf.mxu0 }
 0x2dc   :  { %v2323_v56 = vadd.f32 %v2322_v27, %v2321_v53  ;;  %v1715_v38 = vmax.f32 %v1669_v59, 0.0  ;;  %v1969_v23 = vadd.f32 %v1968_v36, %v1938_v0 }
 0x2dd   :  { %v2324_v35 = vpop.f32.mrf.mxu0 }
 0x2de   :  { %v1674_v9 = vadd.f32 %v2323_v56, %v3835_v25  ;;  %v1939_v41 = vmul.f32 %v1890_v43, %v1715_v38 }
 0x2df   :  { %v2325_v1 = vpop.f32.mrf.mxu0 }
 0x2e0   :  { %v2326_v15 = vadd.f32 %v2325_v1, %v2324_v35  ;;  %v1716_v45 = vmax.f32 %v1674_v9, 0.0  ;;  %v1970_v4 = vadd.f32 %v1969_v23, %v1939_v41 }
 0x2e1   :  { %v2327_v39 = vpop.f32.mrf.mxu0 }
 0x2e2   :  { %v1677_v60 = vadd.f32 %v2326_v15, %v3836_v5  ;;  %v1940_v12 = vmul.f32 %v1895_v46, %v1716_v45 }
 0x2e3   :  { %v2328_v11 = vpop.f32.mrf.mxu0 }
 0x2e4   :  { %v1717_v55 = vmax.f32 %v1677_v60, 0.0  ;;  %v2329_v2 = vadd.f32 %v2328_v11, %v2327_v39  ;;  %v1971_v42 = vadd.f32 %v1970_v4, %v1940_v12 }
 0x2e5   :  { %v2330_v13 = vpop.f32.mrf.mxu0 }
 0x2e6   :  { %v1682_v54 = vadd.f32 %v2329_v2, %v1360_v30  ;;  %v1941_v61 = vmul.f32 %v1900_v28, %v1717_v55 }
 0x2e7   :  { %v2331_v33 = vpop.f32.mrf.mxu0 }
 0x2e8   :  { %v1718_v17 = vmax.f32 %v1682_v54, 0.0  ;;  %v2332_v63 = vadd.f32 %v2331_v33, %v2330_v13  ;;  %v1972_v6 = vadd.f32 %v1971_v42, %v1941_v61 }
 0x2ea   :  { %v1942_v47 = vmul.f32 %v1905_v7, %v1718_v17  ;;  %v1685_v44 = vadd.f32 %v2332_v63, %v1365_v40 }
 0x2ec   :  { %v1719_v62 = vmax.f32 %v1685_v44, 0.0  ;;  %v1973_v37 = vadd.f32 %v1972_v6, %v1942_v47 }
 0x2ee   :  { %v1943_v26 = vmul.f32 %v1910_v21, %v1719_v62 }
 0x2f0   :  { %v1974_v18 = vadd.f32 %v1973_v37, %v1943_v26 }
 0x2f2   :  { %v1975_v34 = vrot.slane %v1974_v18, 4 }
 0x2f4   :  { %v1976_v22 = vadd.f32 %v1975_v34, %v1974_v18 }
 0x2f6   :  { %v1977_v8 = vrot.slane %v1976_v22, 2 }
 0x2f8   :  { %v1978_v53 = vadd.f32 %v1977_v8, %v1976_v22 }
 0x2fa   :  { %v1979_v52 = vrot.slane %v1978_v53, 1 }
 0x2fc   :  { %v1980_v31 = vadd.f32 %v1979_v52, %v1978_v53 }
 0x2fe   :  { %v1991_v43 = vadd.f32 %v1990_v20, %v1980_v31 }
 0x300   :  { %1992 = vst [vmem:[%s3770_s9] sm:$0x1] %v1991_v43 }

</bundles_post_ra>
